<compile_context>
chip_gen: v5e
topology: v5e:2x2
jax: 0.10.0
libtpu: 0.0.40
codegen_flags: <defaults>
</compile_context>

<pallas_src>
import functools

import jax
import jax.numpy as jnp
from jax.experimental import pallas as pl
from jax.experimental.pallas import tpu as pltpu


def _round_up(x, m):
    return (x + m - 1) // m * m


def _lstm_kernel(seq_len,
                 x_ref, wih_ref, whh_ref, b_ref, wfc_ref, bfc_ref,
                 out_ref, h_ref, c_ref, gx_ref):
    """One (batch_block, time_block) grid step of the LSTM + final FC.

    x_ref:   (Tt, Bt, E)  bf16  time tile of embedded inputs (time-major)
    wih_ref: (E, 4Hp)     bf16  fused input->gate weights  [i f g o]
    whh_ref: (Hp, 4Hp)    bf16  fused hidden->gate weights [i f g o]
    b_ref:   (1, 4Hp)     f32   b_ih + b_hh (fused, padded)
    wfc_ref: (Hp, Op)     bf16  FC weight (transposed, padded)
    bfc_ref: (1, Op)      f32   FC bias (padded)
    out_ref: (Bt, Op)     f32   logits (written on the last time block only)
    h_ref, c_ref: (Bt, Hp) f32  VMEM scratch, persist across time blocks
    gx_ref:  (Tt*Bt, 4Hp) f32  VMEM scratch for the hoisted x-projection
    """
    t_blk = pl.program_id(1)
    n_tb = pl.num_programs(1)
    Tt, Bt, E = x_ref.shape
    Hp = whh_ref.shape[0]

    @pl.when(t_blk == 0)
    def _():
        h_ref[...] = jnp.zeros_like(h_ref)
        c_ref[...] = jnp.zeros_like(c_ref)

    # ---- Phase 1: hoisted input projection for the whole time tile ----------
    # One wide MXU matmul (M = Tt*Bt, N = 4Hp) instead of 4 tiny matmuls per
    # timestep; bias is folded in once.  Reshape only merges leading dims
    # (Bt is a multiple of 8), so it is layout-preserving.
    x2d = x_ref[...].reshape(Tt * Bt, E)
    gx_ref[...] = (jnp.dot(x2d, wih_ref[...],
                           preferred_element_type=jnp.float32)
                   + b_ref[...])

    # ---- Phase 2: sequential recurrence (latency-bound part only) -----------
    whh = whh_ref[...]  # stays resident; hoisted out of the loop

    def step(t, carry):
        h = h_ref[...]
        c = c_ref[...]
        row = pl.multiple_of(t * Bt, Bt)
        gates = (gx_ref[pl.ds(row, Bt), :]
                 + jnp.dot(h.astype(jnp.bfloat16), whh,
                           preferred_element_type=jnp.float32))
        i_g = jax.nn.sigmoid(gates[:, 0 * Hp:1 * Hp])
        f_g = jax.nn.sigmoid(gates[:, 1 * Hp:2 * Hp])
        g_g = jnp.tanh(gates[:, 2 * Hp:3 * Hp])
        o_g = jax.nn.sigmoid(gates[:, 3 * Hp:4 * Hp])
        c_new = f_g * c + i_g * g_g
        h_new = o_g * jnp.tanh(c_new)
        # Mask time-padding steps (steps >= real seq_len) so they do not
        # update the state.  Real pad *tokens* still update h/c, matching
        # torch.nn.LSTM without packed sequences.
        valid = (t_blk * Tt + t) < seq_len
        c_ref[...] = jnp.where(valid, c_new, c)
        h_ref[...] = jnp.where(valid, h_new, h)
        return carry

    jax.lax.fori_loop(0, Tt, step, 0, unroll=True)

    # ---- Phase 3: final linear layer on the last hidden state ---------------
    @pl.when(t_blk == n_tb - 1)
    def _():
        out_ref[...] = (jnp.dot(h_ref[...].astype(jnp.bfloat16), wfc_ref[...],
                                preferred_element_type=jnp.float32)
                        + bfc_ref[...])


def lstm_text_classifier_forward(text, params, *, t_tile=32):
    """Forward pass matching LSTMTextClassifier.forward.

    text: (B, T) int32 token indices.  Returns logits (B, output_dim) f32.
    """
    emb = params["embedding"]            # (V, E), row 0 == 0 (padding_idx)
    w_ih = params["w_ih"]                # (4H, E)  gate order [i f g o]
    w_hh = params["w_hh"]                # (4H, H)
    b_ih = params["b_ih"]                # (4H,)
    b_hh = params["b_hh"]                # (4H,)
    w_fc = params["w_fc"]                # (O, H)
    b_fc = params["b_fc"]                # (O,)

    E = emb.shape[1]
    H = w_hh.shape[1]
    O = w_fc.shape[0]
    B, T = text.shape

    # Padded / tiled sizes (lane & sublane friendly).
    Hp = _round_up(H, 32)                # 4*Hp is a multiple of 128
    G4 = 4 * Hp
    Op = _round_up(O, 128)               # lane-dense output store
    Bt = min(_round_up(B, 8), 128)       # batch tile (sublane aligned)
    Bp = _round_up(B, Bt)
    nb = Bp // Bt
    Tt = min(T, t_tile)                  # time tile (streamed over the grid)
    T_pad = _round_up(T, Tt)
    n_t = T_pad // Tt

    # --- Embedding lookup, directly time-major (no extra HBM transpose) ------
    x_tm = jnp.take(emb, text.T, axis=0).astype(jnp.bfloat16)   # (T, B, E)
    x_tm = jnp.pad(x_tm, ((0, T_pad - T), (0, Bp - B), (0, 0)))

    # --- Fused / padded / bf16 weight packing (gate order [i f g o]) ---------
    wih = w_ih.reshape(4, H, E)
    wih = jnp.pad(wih, ((0, 0), (0, Hp - H), (0, 0)))
    wih = jnp.transpose(wih, (2, 0, 1)).reshape(E, G4).astype(jnp.bfloat16)

    whh = w_hh.reshape(4, H, H)
    whh = jnp.pad(whh, ((0, 0), (0, Hp - H), (0, Hp - H)))
    whh = jnp.transpose(whh, (2, 0, 1)).reshape(Hp, G4).astype(jnp.bfloat16)

    b = (b_ih + b_hh).reshape(4, H).astype(jnp.float32)
    b = jnp.pad(b, ((0, 0), (0, Hp - H))).reshape(1, G4)

    wfc = jnp.pad(w_fc, ((0, Op - O), (0, Hp - H))).T.astype(jnp.bfloat16)
    bfc = jnp.pad(b_fc, (0, Op - O)).reshape(1, Op).astype(jnp.float32)

    # --- VMEM budget (explicit so it also fits v7x's 64 MiB) -----------------
    est_vmem = (
        2 * Tt * Bt * E * 2                               # double-buffered x tile
        + (E * G4 + Hp * G4 + Hp * Op) * 2                # pinned bf16 weights
        + (G4 + Op) * 4                                   # biases
        + 2 * Bt * Op * 4                                 # output block
        + (2 * Bt * Hp + Tt * Bt * G4) * 4                # scratch (h, c, gx)
    )
    vmem_limit = int(min(max(2 * est_vmem, 16 * 1024 * 1024), 64 * 1024 * 1024))

    out = pl.pallas_call(
        functools.partial(_lstm_kernel, T),
        out_shape=jax.ShapeDtypeStruct((Bp, Op), jnp.float32),
        grid=(nb, n_t),                                   # batch outer, time inner
        in_specs=[
            pl.BlockSpec((Tt, Bt, E), lambda bi, ti: (ti, bi, 0)),   # x: streamed
            pl.BlockSpec((E, G4),     lambda bi, ti: (0, 0)),        # Wih: pinned
            pl.BlockSpec((Hp, G4),    lambda bi, ti: (0, 0)),        # Whh: pinned
            pl.BlockSpec((1, G4),     lambda bi, ti: (0, 0)),        # bias
            pl.BlockSpec((Hp, Op),    lambda bi, ti: (0, 0)),        # Wfc
            pl.BlockSpec((1, Op),     lambda bi, ti: (0, 0)),        # bfc
        ],
        out_specs=pl.BlockSpec((Bt, Op), lambda bi, ti: (bi, 0)),
        scratch_shapes=[
            pltpu.VMEM((Bt, Hp), jnp.float32),            # h
            pltpu.VMEM((Bt, Hp), jnp.float32),            # c
            pltpu.VMEM((Tt * Bt, G4), jnp.float32),       # gx (hoisted x-projection)
        ],
        compiler_params=pltpu.CompilerParams(
            dimension_semantics=("parallel", "arbitrary"),
            vmem_limit_bytes=vmem_limit,
        ),
    )(x_tm, wih, whh, b, wfc, bfc)

    return out[:B, :O]


def reference_forward(text, params):
    """Pure-JAX reference mirroring the kernel numerics (bf16 MXU operands,
    f32 accumulation & element-wise math); same math as torch.nn.LSTM
    (batch_first, 1 layer) followed by the FC on the last hidden state."""
    f32, bf16 = jnp.float32, jnp.bfloat16
    emb = params["embedding"]
    w_ih = params["w_ih"].astype(bf16)
    w_hh = params["w_hh"].astype(bf16)
    b = (params["b_ih"] + params["b_hh"]).astype(f32)
    w_fc = params["w_fc"].astype(bf16)
    b_fc = params["b_fc"].astype(f32)
    H = params["w_hh"].shape[1]

    x = jnp.take(emb, text, axis=0).astype(bf16)          # (B, T, E)
    B, T, _ = x.shape
    h = jnp.zeros((B, H), f32)
    c = jnp.zeros((B, H), f32)
    for t in range(T):
        gates = (jnp.dot(x[:, t, :], w_ih.T, preferred_element_type=f32)
                 + jnp.dot(h.astype(bf16), w_hh.T, preferred_element_type=f32)
                 + b)                                      # (B, 4H)
        i_g = jax.nn.sigmoid(gates[:, 0 * H:1 * H])
        f_g = jax.nn.sigmoid(gates[:, 1 * H:2 * H])
        g_g = jnp.tanh(gates[:, 2 * H:3 * H])
        o_g = jax.nn.sigmoid(gates[:, 3 * H:4 * H])
        c = f_g * c + i_g * g_g
        h = o_g * jnp.tanh(c)
    return jnp.dot(h.astype(bf16), w_fc.T, preferred_element_type=f32) + b_fc


def init_params(key, vocab_size, embedding_dim, hidden_dim, output_dim):
    ks = jax.random.split(key, 7)
    k = 1.0 / jnp.sqrt(hidden_dim)

    emb = jax.random.normal(ks[0], (vocab_size, embedding_dim), jnp.float32)
    emb = emb.at[0].set(0.0)  # padding_idx=0

    def u(key, shape, bound):
        return jax.random.uniform(key, shape, jnp.float32, -bound, bound)

    return {
        "embedding": emb,
        "w_ih": u(ks[1], (4 * hidden_dim, embedding_dim), k),
        "w_hh": u(ks[2], (4 * hidden_dim, hidden_dim), k),
        "b_ih": u(ks[3], (4 * hidden_dim,), k),
        "b_hh": u(ks[4], (4 * hidden_dim,), k),
        "w_fc": u(ks[5], (output_dim, hidden_dim), k),
        "b_fc": u(ks[6], (output_dim,), k),
    }


if __name__ == "__main__":
    vocab_size, embedding_dim, hidden_dim, output_dim = 50, 16, 32, 4
    batch, seq = 2, 8

    key = jax.random.PRNGKey(0)
    k_params, k_text = jax.random.split(key)
    params = init_params(k_params, vocab_size, embedding_dim, hidden_dim,
                         output_dim)

    text = jax.random.randint(k_text, (batch, seq), 0, vocab_size,
                              dtype=jnp.int32)
    text = text.at[:, -2:].set(0)  # exercise padding_idx tokens

    logits = lstm_text_classifier_forward(text, params)
    logits = jax.block_until_ready(logits)

    ref = reference_forward(text, params)
    assert logits.shape == (batch, output_dim)
    assert jnp.allclose(logits, ref, rtol=1e-2, atol=1e-2), (logits, ref)

    print("KERNEL_OK")
</pallas_src>

<mosaic_0001>
module attributes {stable_mosaic.version = 11 : i64} {
  func.func @_lstm_kernel(%arg0: i32, %arg1: i32, %arg2: memref<8x8x16xbf16, #tpu.memory_space<vmem>>, %arg3: memref<16x128xbf16, #tpu.memory_space<vmem>>, %arg4: memref<32x128xbf16, #tpu.memory_space<vmem>>, %arg5: memref<1x128xf32, #tpu.memory_space<vmem>>, %arg6: memref<32x128xbf16, #tpu.memory_space<vmem>>, %arg7: memref<1x128xf32, #tpu.memory_space<vmem>>, %arg8: memref<8x128xf32, #tpu.memory_space<vmem>>, %arg9: memref<8x32xf32, #tpu.memory_space<vmem>>, %arg10: memref<8x32xf32, #tpu.memory_space<vmem>>, %arg11: memref<64x128xf32, #tpu.memory_space<vmem>>) attributes {dimension_semantics = [#tpu.dimension_semantics<parallel>, #tpu.dimension_semantics<arbitrary>], iteration_bounds = array<i64: 1, 1>, scalar_prefetch = 0 : i64, scratch_operands = 3 : i64, tpu.core_type = #tpu.core_type<tc>, window_params = [{transform_indices = @transform_0, window_bounds = array<i64: 8, 8, 16>}, {pipeline_mode = #tpu.pipeline_mode<synchronous>, transform_indices = @transform_1, window_bounds = array<i64: 16, 128>}, {pipeline_mode = #tpu.pipeline_mode<synchronous>, transform_indices = @transform_2, window_bounds = array<i64: 32, 128>}, {pipeline_mode = #tpu.pipeline_mode<synchronous>, transform_indices = @transform_3, window_bounds = array<i64: 1, 128>}, {pipeline_mode = #tpu.pipeline_mode<synchronous>, transform_indices = @transform_4, window_bounds = array<i64: 32, 128>}, {pipeline_mode = #tpu.pipeline_mode<synchronous>, transform_indices = @transform_5, window_bounds = array<i64: 1, 128>}, {transform_indices = @transform_6, window_bounds = array<i64: 8, 128>}]} {
    %c0_i32 = arith.constant 0 : i32
    %0 = arith.cmpi eq, %arg1, %c0_i32 : i32
    %1 = arith.extui %0 : i1 to i32
    %c0_i32_0 = arith.constant 0 : i32
    %2 = arith.cmpi ne, %1, %c0_i32_0 : i32
    scf.if %2 {
      %cst_142 = arith.constant 0.000000e+00 : f32
      %343 = vector.broadcast %cst_142 : f32 to vector<8x32xf32>
      %c0_143 = arith.constant 0 : index
      %c0_144 = arith.constant 0 : index
      %344 = vector.load %arg9[%c0_143, %c0_144] : memref<8x32xf32, #tpu.memory_space<vmem>>, vector<8x32xf32>
      tpu.vector_store %arg9[%c0_143, %c0_144], %343 {strides = array<i32>} : memref<8x32xf32, #tpu.memory_space<vmem>>, vector<8x32xf32>,
      %cst_145 = arith.constant 0.000000e+00 : f32
      %345 = vector.broadcast %cst_145 : f32 to vector<8x32xf32>
      %c0_146 = arith.constant 0 : index
      %c0_147 = arith.constant 0 : index
      %346 = vector.load %arg10[%c0_146, %c0_147] : memref<8x32xf32, #tpu.memory_space<vmem>>, vector<8x32xf32>
      tpu.vector_store %arg10[%c0_146, %c0_147], %345 {strides = array<i32>} : memref<8x32xf32, #tpu.memory_space<vmem>>, vector<8x32xf32>,
    } else {
    }
    %c0 = arith.constant 0 : index
    %c0_1 = arith.constant 0 : index
    %c0_2 = arith.constant 0 : index
    %3 = vector.load %arg2[%c0, %c0_1, %c0_2] : memref<8x8x16xbf16, #tpu.memory_space<vmem>>, vector<8x8x16xbf16>
    %4 = vector.shape_cast %3 : vector<8x8x16xbf16> to vector<64x16xbf16>
    %c0_3 = arith.constant 0 : index
    %c0_4 = arith.constant 0 : index
    %5 = vector.load %arg3[%c0_3, %c0_4] : memref<16x128xbf16, #tpu.memory_space<vmem>>, vector<16x128xbf16>
    %cst = arith.constant dense<0.000000e+00> : vector<64x128xf32>
    %6 = tpu.matmul %4, %5, %cst {dimension_numbers = #tpu.dot_dimension_numbers<[1], [0], [0], [1], [0, 0, 1, 1], [], []>} : vector<64x16xbf16>, vector<16x128xbf16>, vector<64x128xf32> -> vector<64x128xf32>
    %c0_5 = arith.constant 0 : index
    %c0_6 = arith.constant 0 : index
    %7 = vector.load %arg5[%c0_5, %c0_6] : memref<1x128xf32, #tpu.memory_space<vmem>>, vector<1x128xf32>
    %8 = vector.broadcast %7 : vector<1x128xf32> to vector<64x128xf32>
    %9 = arith.addf %6, %8 : vector<64x128xf32>
    %c0_7 = arith.constant 0 : index
    %c0_8 = arith.constant 0 : index
    %10 = vector.load %arg11[%c0_7, %c0_8] : memref<64x128xf32, #tpu.memory_space<vmem>>, vector<64x128xf32>
    tpu.vector_store %arg11[%c0_7, %c0_8], %9 {strides = array<i32>} : memref<64x128xf32, #tpu.memory_space<vmem>>, vector<64x128xf32>,
    %c0_9 = arith.constant 0 : index
    %c0_10 = arith.constant 0 : index
    %11 = vector.load %arg4[%c0_9, %c0_10] : memref<32x128xbf16, #tpu.memory_space<vmem>>, vector<32x128xbf16>
    %c0_i32_11 = arith.constant 0 : i32
    %c0_12 = arith.constant 0 : index
    %c0_13 = arith.constant 0 : index
    %12 = vector.load %arg9[%c0_12, %c0_13] : memref<8x32xf32, #tpu.memory_space<vmem>>, vector<8x32xf32>
    %c0_14 = arith.constant 0 : index
    %c0_15 = arith.constant 0 : index
    %13 = vector.load %arg10[%c0_14, %c0_15] : memref<8x32xf32, #tpu.memory_space<vmem>>, vector<8x32xf32>
    %c8_i32 = arith.constant 8 : i32
    %14 = arith.muli %c0_i32_11, %c8_i32 : i32
    %15 = tpu.assume_multiple %14, 8 : i32
    %16 = arith.index_cast %15 : i32 to index
    %c0_16 = arith.constant 0 : index
    %17 = vector.load %arg11[%16, %c0_16] : memref<64x128xf32, #tpu.memory_space<vmem>>, vector<8x128xf32>
    %18 = arith.truncf %12 : vector<8x32xf32> to vector<8x32xbf16>
    %cst_17 = arith.constant dense<0.000000e+00> : vector<8x128xf32>
    %19 = tpu.matmul %18, %11, %cst_17 {dimension_numbers = #tpu.dot_dimension_numbers<[1], [0], [0], [1], [0, 0, 1, 1], [], []>} : vector<8x32xbf16>, vector<32x128xbf16>, vector<8x128xf32> -> vector<8x128xf32>
    %20 = arith.addf %17, %19 : vector<8x128xf32>
    %21 = vector.extract_strided_slice %20 {offsets = [0, 0], sizes = [8, 32], strides = [1, 1]} : vector<8x128xf32> to vector<8x32xf32>
    %22 = arith.negf %21 : vector<8x32xf32>
    %23 = math.exp %22 : vector<8x32xf32>
    %cst_18 = arith.constant 1.000000e+00 : f32
    %24 = vector.broadcast %cst_18 : f32 to vector<8x32xf32>
    %25 = arith.addf %24, %23 : vector<8x32xf32>
    %26 = arith.divf %24, %25 : vector<8x32xf32>
    %27 = vector.extract_strided_slice %20 {offsets = [0, 32], sizes = [8, 32], strides = [1, 1]} : vector<8x128xf32> to vector<8x32xf32>
    %28 = arith.negf %27 : vector<8x32xf32>
    %29 = math.exp %28 : vector<8x32xf32>
    %cst_19 = arith.constant 1.000000e+00 : f32
    %30 = vector.broadcast %cst_19 : f32 to vector<8x32xf32>
    %31 = arith.addf %30, %29 : vector<8x32xf32>
    %32 = arith.divf %30, %31 : vector<8x32xf32>
    %33 = vector.extract_strided_slice %20 {offsets = [0, 64], sizes = [8, 32], strides = [1, 1]} : vector<8x128xf32> to vector<8x32xf32>
    %34 = math.tanh %33 : vector<8x32xf32>
    %35 = vector.extract_strided_slice %20 {offsets = [0, 96], sizes = [8, 32], strides = [1, 1]} : vector<8x128xf32> to vector<8x32xf32>
    %36 = arith.negf %35 : vector<8x32xf32>
    %37 = math.exp %36 : vector<8x32xf32>
    %cst_20 = arith.constant 1.000000e+00 : f32
    %38 = vector.broadcast %cst_20 : f32 to vector<8x32xf32>
    %39 = arith.addf %38, %37 : vector<8x32xf32>
    %40 = arith.divf %38, %39 : vector<8x32xf32>
    %41 = arith.mulf %32, %13 : vector<8x32xf32>
    %42 = arith.mulf %26, %34 : vector<8x32xf32>
    %43 = arith.addf %41, %42 : vector<8x32xf32>
    %44 = math.tanh %43 : vector<8x32xf32>
    %45 = arith.mulf %40, %44 : vector<8x32xf32>
    %c8_i32_21 = arith.constant 8 : i32
    %46 = arith.muli %arg1, %c8_i32_21 : i32
    %47 = arith.addi %46, %c0_i32_11 : i32
    %c8_i32_22 = arith.constant 8 : i32
    %48 = arith.cmpi slt, %47, %c8_i32_22 : i32
    %49 = arith.select %48, %43, %13 : vector<8x32xf32>
    %c0_23 = arith.constant 0 : index
    %c0_24 = arith.constant 0 : index
    %50 = vector.load %arg10[%c0_23, %c0_24] : memref<8x32xf32, #tpu.memory_space<vmem>>, vector<8x32xf32>
    tpu.vector_store %arg10[%c0_23, %c0_24], %49 {strides = array<i32>} : memref<8x32xf32, #tpu.memory_space<vmem>>, vector<8x32xf32>,
    %51 = arith.select %48, %45, %12 : vector<8x32xf32>
    %c0_25 = arith.constant 0 : index
    %c0_26 = arith.constant 0 : index
    %52 = vector.load %arg9[%c0_25, %c0_26] : memref<8x32xf32, #tpu.memory_space<vmem>>, vector<8x32xf32>
    tpu.vector_store %arg9[%c0_25, %c0_26], %51 {strides = array<i32>} : memref<8x32xf32, #tpu.memory_space<vmem>>, vector<8x32xf32>,
    %c1_i32 = arith.constant 1 : i32
    %c0_27 = arith.constant 0 : index
    %c0_28 = arith.constant 0 : index
    %53 = vector.load %arg9[%c0_27, %c0_28] : memref<8x32xf32, #tpu.memory_space<vmem>>, vector<8x32xf32>
    %c0_29 = arith.constant 0 : index
    %c0_30 = arith.constant 0 : index
    %54 = vector.load %arg10[%c0_29, %c0_30] : memref<8x32xf32, #tpu.memory_space<vmem>>, vector<8x32xf32>
    %c8_i32_31 = arith.constant 8 : i32
    %55 = arith.muli %c1_i32, %c8_i32_31 : i32
    %56 = tpu.assume_multiple %55, 8 : i32
    %57 = arith.index_cast %56 : i32 to index
    %c0_32 = arith.constant 0 : index
    %58 = vector.load %arg11[%57, %c0_32] : memref<64x128xf32, #tpu.memory_space<vmem>>, vector<8x128xf32>
    %59 = arith.truncf %53 : vector<8x32xf32> to vector<8x32xbf16>
    %cst_33 = arith.constant dense<0.000000e+00> : vector<8x128xf32>
    %60 = tpu.matmul %59, %11, %cst_33 {dimension_numbers = #tpu.dot_dimension_numbers<[1], [0], [0], [1], [0, 0, 1, 1], [], []>} : vector<8x32xbf16>, vector<32x128xbf16>, vector<8x128xf32> -> vector<8x128xf32>
    %61 = arith.addf %58, %60 : vector<8x128xf32>
    %62 = vector.extract_strided_slice %61 {offsets = [0, 0], sizes = [8, 32], strides = [1, 1]} : vector<8x128xf32> to vector<8x32xf32>
    %63 = arith.negf %62 : vector<8x32xf32>
    %64 = math.exp %63 : vector<8x32xf32>
    %cst_34 = arith.constant 1.000000e+00 : f32
    %65 = vector.broadcast %cst_34 : f32 to vector<8x32xf32>
    %66 = arith.addf %65, %64 : vector<8x32xf32>
    %67 = arith.divf %65, %66 : vector<8x32xf32>
    %68 = vector.extract_strided_slice %61 {offsets = [0, 32], sizes = [8, 32], strides = [1, 1]} : vector<8x128xf32> to vector<8x32xf32>
    %69 = arith.negf %68 : vector<8x32xf32>
    %70 = math.exp %69 : vector<8x32xf32>
    %cst_35 = arith.constant 1.000000e+00 : f32
    %71 = vector.broadcast %cst_35 : f32 to vector<8x32xf32>
    %72 = arith.addf %71, %70 : vector<8x32xf32>
    %73 = arith.divf %71, %72 : vector<8x32xf32>
    %74 = vector.extract_strided_slice %61 {offsets = [0, 64], sizes = [8, 32], strides = [1, 1]} : vector<8x128xf32> to vector<8x32xf32>
    %75 = math.tanh %74 : vector<8x32xf32>
    %76 = vector.extract_strided_slice %61 {offsets = [0, 96], sizes = [8, 32], strides = [1, 1]} : vector<8x128xf32> to vector<8x32xf32>
    %77 = arith.negf %76 : vector<8x32xf32>
    %78 = math.exp %77 : vector<8x32xf32>
    %cst_36 = arith.constant 1.000000e+00 : f32
    %79 = vector.broadcast %cst_36 : f32 to vector<8x32xf32>
    %80 = arith.addf %79, %78 : vector<8x32xf32>
    %81 = arith.divf %79, %80 : vector<8x32xf32>
    %82 = arith.mulf %73, %54 : vector<8x32xf32>
    %83 = arith.mulf %67, %75 : vector<8x32xf32>
    %84 = arith.addf %82, %83 : vector<8x32xf32>
    %85 = math.tanh %84 : vector<8x32xf32>
    %86 = arith.mulf %81, %85 : vector<8x32xf32>
    %c8_i32_37 = arith.constant 8 : i32
    %87 = arith.muli %arg1, %c8_i32_37 : i32
    %88 = arith.addi %87, %c1_i32 : i32
    %c8_i32_38 = arith.constant 8 : i32
    %89 = arith.cmpi slt, %88, %c8_i32_38 : i32
    %90 = arith.select %89, %84, %54 : vector<8x32xf32>
    %c0_39 = arith.constant 0 : index
    %c0_40 = arith.constant 0 : index
    %91 = vector.load %arg10[%c0_39, %c0_40] : memref<8x32xf32, #tpu.memory_space<vmem>>, vector<8x32xf32>
    tpu.vector_store %arg10[%c0_39, %c0_40], %90 {strides = array<i32>} : memref<8x32xf32, #tpu.memory_space<vmem>>, vector<8x32xf32>,
    %92 = arith.select %89, %86, %53 : vector<8x32xf32>
    %c0_41 = arith.constant 0 : index
    %c0_42 = arith.constant 0 : index
    %93 = vector.load %arg9[%c0_41, %c0_42] : memref<8x32xf32, #tpu.memory_space<vmem>>, vector<8x32xf32>
    tpu.vector_store %arg9[%c0_41, %c0_42], %92 {strides = array<i32>} : memref<8x32xf32, #tpu.memory_space<vmem>>, vector<8x32xf32>,
    %c2_i32 = arith.constant 2 : i32
    %c0_43 = arith.constant 0 : index
    %c0_44 = arith.constant 0 : index
    %94 = vector.load %arg9[%c0_43, %c0_44] : memref<8x32xf32, #tpu.memory_space<vmem>>, vector<8x32xf32>
    %c0_45 = arith.constant 0 : index
    %c0_46 = arith.constant 0 : index
    %95 = vector.load %arg10[%c0_45, %c0_46] : memref<8x32xf32, #tpu.memory_space<vmem>>, vector<8x32xf32>
    %c8_i32_47 = arith.constant 8 : i32
    %96 = arith.muli %c2_i32, %c8_i32_47 : i32
    %97 = tpu.assume_multiple %96, 8 : i32
    %98 = arith.index_cast %97 : i32 to index
    %c0_48 = arith.constant 0 : index
    %99 = vector.load %arg11[%98, %c0_48] : memref<64x128xf32, #tpu.memory_space<vmem>>, vector<8x128xf32>
    %100 = arith.truncf %94 : vector<8x32xf32> to vector<8x32xbf16>
    %cst_49 = arith.constant dense<0.000000e+00> : vector<8x128xf32>
    %101 = tpu.matmul %100, %11, %cst_49 {dimension_numbers = #tpu.dot_dimension_numbers<[1], [0], [0], [1], [0, 0, 1, 1], [], []>} : vector<8x32xbf16>, vector<32x128xbf16>, vector<8x128xf32> -> vector<8x128xf32>
    %102 = arith.addf %99, %101 : vector<8x128xf32>
    %103 = vector.extract_strided_slice %102 {offsets = [0, 0], sizes = [8, 32], strides = [1, 1]} : vector<8x128xf32> to vector<8x32xf32>
    %104 = arith.negf %103 : vector<8x32xf32>
    %105 = math.exp %104 : vector<8x32xf32>
    %cst_50 = arith.constant 1.000000e+00 : f32
    %106 = vector.broadcast %cst_50 : f32 to vector<8x32xf32>
    %107 = arith.addf %106, %105 : vector<8x32xf32>
    %108 = arith.divf %106, %107 : vector<8x32xf32>
    %109 = vector.extract_strided_slice %102 {offsets = [0, 32], sizes = [8, 32], strides = [1, 1]} : vector<8x128xf32> to vector<8x32xf32>
    %110 = arith.negf %109 : vector<8x32xf32>
    %111 = math.exp %110 : vector<8x32xf32>
    %cst_51 = arith.constant 1.000000e+00 : f32
    %112 = vector.broadcast %cst_51 : f32 to vector<8x32xf32>
    %113 = arith.addf %112, %111 : vector<8x32xf32>
    %114 = arith.divf %112, %113 : vector<8x32xf32>
    %115 = vector.extract_strided_slice %102 {offsets = [0, 64], sizes = [8, 32], strides = [1, 1]} : vector<8x128xf32> to vector<8x32xf32>
    %116 = math.tanh %115 : vector<8x32xf32>
    %117 = vector.extract_strided_slice %102 {offsets = [0, 96], sizes = [8, 32], strides = [1, 1]} : vector<8x128xf32> to vector<8x32xf32>
    %118 = arith.negf %117 : vector<8x32xf32>
    %119 = math.exp %118 : vector<8x32xf32>
    %cst_52 = arith.constant 1.000000e+00 : f32
    %120 = vector.broadcast %cst_52 : f32 to vector<8x32xf32>
    %121 = arith.addf %120, %119 : vector<8x32xf32>
    %122 = arith.divf %120, %121 : vector<8x32xf32>
    %123 = arith.mulf %114, %95 : vector<8x32xf32>
    %124 = arith.mulf %108, %116 : vector<8x32xf32>
    %125 = arith.addf %123, %124 : vector<8x32xf32>
    %126 = math.tanh %125 : vector<8x32xf32>
    %127 = arith.mulf %122, %126 : vector<8x32xf32>
    %c8_i32_53 = arith.constant 8 : i32
    %128 = arith.muli %arg1, %c8_i32_53 : i32
    %129 = arith.addi %128, %c2_i32 : i32
    %c8_i32_54 = arith.constant 8 : i32
    %130 = arith.cmpi slt, %129, %c8_i32_54 : i32
    %131 = arith.select %130, %125, %95 : vector<8x32xf32>
    %c0_55 = arith.constant 0 : index
    %c0_56 = arith.constant 0 : index
    %132 = vector.load %arg10[%c0_55, %c0_56] : memref<8x32xf32, #tpu.memory_space<vmem>>, vector<8x32xf32>
    tpu.vector_store %arg10[%c0_55, %c0_56], %131 {strides = array<i32>} : memref<8x32xf32, #tpu.memory_space<vmem>>, vector<8x32xf32>,
    %133 = arith.select %130, %127, %94 : vector<8x32xf32>
    %c0_57 = arith.constant 0 : index
    %c0_58 = arith.constant 0 : index
    %134 = vector.load %arg9[%c0_57, %c0_58] : memref<8x32xf32, #tpu.memory_space<vmem>>, vector<8x32xf32>
    tpu.vector_store %arg9[%c0_57, %c0_58], %133 {strides = array<i32>} : memref<8x32xf32, #tpu.memory_space<vmem>>, vector<8x32xf32>,
    %c3_i32 = arith.constant 3 : i32
    %c0_59 = arith.constant 0 : index
    %c0_60 = arith.constant 0 : index
    %135 = vector.load %arg9[%c0_59, %c0_60] : memref<8x32xf32, #tpu.memory_space<vmem>>, vector<8x32xf32>
    %c0_61 = arith.constant 0 : index
    %c0_62 = arith.constant 0 : index
    %136 = vector.load %arg10[%c0_61, %c0_62] : memref<8x32xf32, #tpu.memory_space<vmem>>, vector<8x32xf32>
    %c8_i32_63 = arith.constant 8 : i32
    %137 = arith.muli %c3_i32, %c8_i32_63 : i32
    %138 = tpu.assume_multiple %137, 8 : i32
    %139 = arith.index_cast %138 : i32 to index
    %c0_64 = arith.constant 0 : index
    %140 = vector.load %arg11[%139, %c0_64] : memref<64x128xf32, #tpu.memory_space<vmem>>, vector<8x128xf32>
    %141 = arith.truncf %135 : vector<8x32xf32> to vector<8x32xbf16>
    %cst_65 = arith.constant dense<0.000000e+00> : vector<8x128xf32>
    %142 = tpu.matmul %141, %11, %cst_65 {dimension_numbers = #tpu.dot_dimension_numbers<[1], [0], [0], [1], [0, 0, 1, 1], [], []>} : vector<8x32xbf16>, vector<32x128xbf16>, vector<8x128xf32> -> vector<8x128xf32>
    %143 = arith.addf %140, %142 : vector<8x128xf32>
    %144 = vector.extract_strided_slice %143 {offsets = [0, 0], sizes = [8, 32], strides = [1, 1]} : vector<8x128xf32> to vector<8x32xf32>
    %145 = arith.negf %144 : vector<8x32xf32>
    %146 = math.exp %145 : vector<8x32xf32>
    %cst_66 = arith.constant 1.000000e+00 : f32
    %147 = vector.broadcast %cst_66 : f32 to vector<8x32xf32>
    %148 = arith.addf %147, %146 : vector<8x32xf32>
    %149 = arith.divf %147, %148 : vector<8x32xf32>
    %150 = vector.extract_strided_slice %143 {offsets = [0, 32], sizes = [8, 32], strides = [1, 1]} : vector<8x128xf32> to vector<8x32xf32>
    %151 = arith.negf %150 : vector<8x32xf32>
    %152 = math.exp %151 : vector<8x32xf32>
    %cst_67 = arith.constant 1.000000e+00 : f32
    %153 = vector.broadcast %cst_67 : f32 to vector<8x32xf32>
    %154 = arith.addf %153, %152 : vector<8x32xf32>
    %155 = arith.divf %153, %154 : vector<8x32xf32>
    %156 = vector.extract_strided_slice %143 {offsets = [0, 64], sizes = [8, 32], strides = [1, 1]} : vector<8x128xf32> to vector<8x32xf32>
    %157 = math.tanh %156 : vector<8x32xf32>
    %158 = vector.extract_strided_slice %143 {offsets = [0, 96], sizes = [8, 32], strides = [1, 1]} : vector<8x128xf32> to vector<8x32xf32>
    %159 = arith.negf %158 : vector<8x32xf32>
    %160 = math.exp %159 : vector<8x32xf32>
    %cst_68 = arith.constant 1.000000e+00 : f32
    %161 = vector.broadcast %cst_68 : f32 to vector<8x32xf32>
    %162 = arith.addf %161, %160 : vector<8x32xf32>
    %163 = arith.divf %161, %162 : vector<8x32xf32>
    %164 = arith.mulf %155, %136 : vector<8x32xf32>
    %165 = arith.mulf %149, %157 : vector<8x32xf32>
    %166 = arith.addf %164, %165 : vector<8x32xf32>
    %167 = math.tanh %166 : vector<8x32xf32>
    %168 = arith.mulf %163, %167 : vector<8x32xf32>
    %c8_i32_69 = arith.constant 8 : i32
    %169 = arith.muli %arg1, %c8_i32_69 : i32
    %170 = arith.addi %169, %c3_i32 : i32
    %c8_i32_70 = arith.constant 8 : i32
    %171 = arith.cmpi slt, %170, %c8_i32_70 : i32
    %172 = arith.select %171, %166, %136 : vector<8x32xf32>
    %c0_71 = arith.constant 0 : index
    %c0_72 = arith.constant 0 : index
    %173 = vector.load %arg10[%c0_71, %c0_72] : memref<8x32xf32, #tpu.memory_space<vmem>>, vector<8x32xf32>
    tpu.vector_store %arg10[%c0_71, %c0_72], %172 {strides = array<i32>} : memref<8x32xf32, #tpu.memory_space<vmem>>, vector<8x32xf32>,
    %174 = arith.select %171, %168, %135 : vector<8x32xf32>
    %c0_73 = arith.constant 0 : index
    %c0_74 = arith.constant 0 : index
    %175 = vector.load %arg9[%c0_73, %c0_74] : memref<8x32xf32, #tpu.memory_space<vmem>>, vector<8x32xf32>
    tpu.vector_store %arg9[%c0_73, %c0_74], %174 {strides = array<i32>} : memref<8x32xf32, #tpu.memory_space<vmem>>, vector<8x32xf32>,
    %c4_i32 = arith.constant 4 : i32
    %c0_75 = arith.constant 0 : index
    %c0_76 = arith.constant 0 : index
    %176 = vector.load %arg9[%c0_75, %c0_76] : memref<8x32xf32, #tpu.memory_space<vmem>>, vector<8x32xf32>
    %c0_77 = arith.constant 0 : index
    %c0_78 = arith.constant 0 : index
    %177 = vector.load %arg10[%c0_77, %c0_78] : memref<8x32xf32, #tpu.memory_space<vmem>>, vector<8x32xf32>
    %c8_i32_79 = arith.constant 8 : i32
    %178 = arith.muli %c4_i32, %c8_i32_79 : i32
    %179 = tpu.assume_multiple %178, 8 : i32
    %180 = arith.index_cast %179 : i32 to index
    %c0_80 = arith.constant 0 : index
    %181 = vector.load %arg11[%180, %c0_80] : memref<64x128xf32, #tpu.memory_space<vmem>>, vector<8x128xf32>
    %182 = arith.truncf %176 : vector<8x32xf32> to vector<8x32xbf16>
    %cst_81 = arith.constant dense<0.000000e+00> : vector<8x128xf32>
    %183 = tpu.matmul %182, %11, %cst_81 {dimension_numbers = #tpu.dot_dimension_numbers<[1], [0], [0], [1], [0, 0, 1, 1], [], []>} : vector<8x32xbf16>, vector<32x128xbf16>, vector<8x128xf32> -> vector<8x128xf32>
    %184 = arith.addf %181, %183 : vector<8x128xf32>
    %185 = vector.extract_strided_slice %184 {offsets = [0, 0], sizes = [8, 32], strides = [1, 1]} : vector<8x128xf32> to vector<8x32xf32>
    %186 = arith.negf %185 : vector<8x32xf32>
    %187 = math.exp %186 : vector<8x32xf32>
    %cst_82 = arith.constant 1.000000e+00 : f32
    %188 = vector.broadcast %cst_82 : f32 to vector<8x32xf32>
    %189 = arith.addf %188, %187 : vector<8x32xf32>
    %190 = arith.divf %188, %189 : vector<8x32xf32>
    %191 = vector.extract_strided_slice %184 {offsets = [0, 32], sizes = [8, 32], strides = [1, 1]} : vector<8x128xf32> to vector<8x32xf32>
    %192 = arith.negf %191 : vector<8x32xf32>
    %193 = math.exp %192 : vector<8x32xf32>
    %cst_83 = arith.constant 1.000000e+00 : f32
    %194 = vector.broadcast %cst_83 : f32 to vector<8x32xf32>
    %195 = arith.addf %194, %193 : vector<8x32xf32>
    %196 = arith.divf %194, %195 : vector<8x32xf32>
    %197 = vector.extract_strided_slice %184 {offsets = [0, 64], sizes = [8, 32], strides = [1, 1]} : vector<8x128xf32> to vector<8x32xf32>
    %198 = math.tanh %197 : vector<8x32xf32>
    %199 = vector.extract_strided_slice %184 {offsets = [0, 96], sizes = [8, 32], strides = [1, 1]} : vector<8x128xf32> to vector<8x32xf32>
    %200 = arith.negf %199 : vector<8x32xf32>
    %201 = math.exp %200 : vector<8x32xf32>
    %cst_84 = arith.constant 1.000000e+00 : f32
    %202 = vector.broadcast %cst_84 : f32 to vector<8x32xf32>
    %203 = arith.addf %202, %201 : vector<8x32xf32>
    %204 = arith.divf %202, %203 : vector<8x32xf32>
    %205 = arith.mulf %196, %177 : vector<8x32xf32>
    %206 = arith.mulf %190, %198 : vector<8x32xf32>
    %207 = arith.addf %205, %206 : vector<8x32xf32>
    %208 = math.tanh %207 : vector<8x32xf32>
    %209 = arith.mulf %204, %208 : vector<8x32xf32>
    %c8_i32_85 = arith.constant 8 : i32
    %210 = arith.muli %arg1, %c8_i32_85 : i32
    %211 = arith.addi %210, %c4_i32 : i32
    %c8_i32_86 = arith.constant 8 : i32
    %212 = arith.cmpi slt, %211, %c8_i32_86 : i32
    %213 = arith.select %212, %207, %177 : vector<8x32xf32>
    %c0_87 = arith.constant 0 : index
    %c0_88 = arith.constant 0 : index
    %214 = vector.load %arg10[%c0_87, %c0_88] : memref<8x32xf32, #tpu.memory_space<vmem>>, vector<8x32xf32>
    tpu.vector_store %arg10[%c0_87, %c0_88], %213 {strides = array<i32>} : memref<8x32xf32, #tpu.memory_space<vmem>>, vector<8x32xf32>,
    %215 = arith.select %212, %209, %176 : vector<8x32xf32>
    %c0_89 = arith.constant 0 : index
    %c0_90 = arith.constant 0 : index
    %216 = vector.load %arg9[%c0_89, %c0_90] : memref<8x32xf32, #tpu.memory_space<vmem>>, vector<8x32xf32>
    tpu.vector_store %arg9[%c0_89, %c0_90], %215 {strides = array<i32>} : memref<8x32xf32, #tpu.memory_space<vmem>>, vector<8x32xf32>,
    %c5_i32 = arith.constant 5 : i32
    %c0_91 = arith.constant 0 : index
    %c0_92 = arith.constant 0 : index
    %217 = vector.load %arg9[%c0_91, %c0_92] : memref<8x32xf32, #tpu.memory_space<vmem>>, vector<8x32xf32>
    %c0_93 = arith.constant 0 : index
    %c0_94 = arith.constant 0 : index
    %218 = vector.load %arg10[%c0_93, %c0_94] : memref<8x32xf32, #tpu.memory_space<vmem>>, vector<8x32xf32>
    %c8_i32_95 = arith.constant 8 : i32
    %219 = arith.muli %c5_i32, %c8_i32_95 : i32
    %220 = tpu.assume_multiple %219, 8 : i32
    %221 = arith.index_cast %220 : i32 to index
    %c0_96 = arith.constant 0 : index
    %222 = vector.load %arg11[%221, %c0_96] : memref<64x128xf32, #tpu.memory_space<vmem>>, vector<8x128xf32>
    %223 = arith.truncf %217 : vector<8x32xf32> to vector<8x32xbf16>
    %cst_97 = arith.constant dense<0.000000e+00> : vector<8x128xf32>
    %224 = tpu.matmul %223, %11, %cst_97 {dimension_numbers = #tpu.dot_dimension_numbers<[1], [0], [0], [1], [0, 0, 1, 1], [], []>} : vector<8x32xbf16>, vector<32x128xbf16>, vector<8x128xf32> -> vector<8x128xf32>
    %225 = arith.addf %222, %224 : vector<8x128xf32>
    %226 = vector.extract_strided_slice %225 {offsets = [0, 0], sizes = [8, 32], strides = [1, 1]} : vector<8x128xf32> to vector<8x32xf32>
    %227 = arith.negf %226 : vector<8x32xf32>
    %228 = math.exp %227 : vector<8x32xf32>
    %cst_98 = arith.constant 1.000000e+00 : f32
    %229 = vector.broadcast %cst_98 : f32 to vector<8x32xf32>
    %230 = arith.addf %229, %228 : vector<8x32xf32>
    %231 = arith.divf %229, %230 : vector<8x32xf32>
    %232 = vector.extract_strided_slice %225 {offsets = [0, 32], sizes = [8, 32], strides = [1, 1]} : vector<8x128xf32> to vector<8x32xf32>
    %233 = arith.negf %232 : vector<8x32xf32>
    %234 = math.exp %233 : vector<8x32xf32>
    %cst_99 = arith.constant 1.000000e+00 : f32
    %235 = vector.broadcast %cst_99 : f32 to vector<8x32xf32>
    %236 = arith.addf %235, %234 : vector<8x32xf32>
    %237 = arith.divf %235, %236 : vector<8x32xf32>
    %238 = vector.extract_strided_slice %225 {offsets = [0, 64], sizes = [8, 32], strides = [1, 1]} : vector<8x128xf32> to vector<8x32xf32>
    %239 = math.tanh %238 : vector<8x32xf32>
    %240 = vector.extract_strided_slice %225 {offsets = [0, 96], sizes = [8, 32], strides = [1, 1]} : vector<8x128xf32> to vector<8x32xf32>
    %241 = arith.negf %240 : vector<8x32xf32>
    %242 = math.exp %241 : vector<8x32xf32>
    %cst_100 = arith.constant 1.000000e+00 : f32
    %243 = vector.broadcast %cst_100 : f32 to vector<8x32xf32>
    %244 = arith.addf %243, %242 : vector<8x32xf32>
    %245 = arith.divf %243, %244 : vector<8x32xf32>
    %246 = arith.mulf %237, %218 : vector<8x32xf32>
    %247 = arith.mulf %231, %239 : vector<8x32xf32>
    %248 = arith.addf %246, %247 : vector<8x32xf32>
    %249 = math.tanh %248 : vector<8x32xf32>
    %250 = arith.mulf %245, %249 : vector<8x32xf32>
    %c8_i32_101 = arith.constant 8 : i32
    %251 = arith.muli %arg1, %c8_i32_101 : i32
    %252 = arith.addi %251, %c5_i32 : i32
    %c8_i32_102 = arith.constant 8 : i32
    %253 = arith.cmpi slt, %252, %c8_i32_102 : i32
    %254 = arith.select %253, %248, %218 : vector<8x32xf32>
    %c0_103 = arith.constant 0 : index
    %c0_104 = arith.constant 0 : index
    %255 = vector.load %arg10[%c0_103, %c0_104] : memref<8x32xf32, #tpu.memory_space<vmem>>, vector<8x32xf32>
    tpu.vector_store %arg10[%c0_103, %c0_104], %254 {strides = array<i32>} : memref<8x32xf32, #tpu.memory_space<vmem>>, vector<8x32xf32>,
    %256 = arith.select %253, %250, %217 : vector<8x32xf32>
    %c0_105 = arith.constant 0 : index
    %c0_106 = arith.constant 0 : index
    %257 = vector.load %arg9[%c0_105, %c0_106] : memref<8x32xf32, #tpu.memory_space<vmem>>, vector<8x32xf32>
    tpu.vector_store %arg9[%c0_105, %c0_106], %256 {strides = array<i32>} : memref<8x32xf32, #tpu.memory_space<vmem>>, vector<8x32xf32>,
    %c6_i32 = arith.constant 6 : i32
    %c0_107 = arith.constant 0 : index
    %c0_108 = arith.constant 0 : index
    %258 = vector.load %arg9[%c0_107, %c0_108] : memref<8x32xf32, #tpu.memory_space<vmem>>, vector<8x32xf32>
    %c0_109 = arith.constant 0 : index
    %c0_110 = arith.constant 0 : index
    %259 = vector.load %arg10[%c0_109, %c0_110] : memref<8x32xf32, #tpu.memory_space<vmem>>, vector<8x32xf32>
    %c8_i32_111 = arith.constant 8 : i32
    %260 = arith.muli %c6_i32, %c8_i32_111 : i32
    %261 = tpu.assume_multiple %260, 8 : i32
    %262 = arith.index_cast %261 : i32 to index
    %c0_112 = arith.constant 0 : index
    %263 = vector.load %arg11[%262, %c0_112] : memref<64x128xf32, #tpu.memory_space<vmem>>, vector<8x128xf32>
    %264 = arith.truncf %258 : vector<8x32xf32> to vector<8x32xbf16>
    %cst_113 = arith.constant dense<0.000000e+00> : vector<8x128xf32>
    %265 = tpu.matmul %264, %11, %cst_113 {dimension_numbers = #tpu.dot_dimension_numbers<[1], [0], [0], [1], [0, 0, 1, 1], [], []>} : vector<8x32xbf16>, vector<32x128xbf16>, vector<8x128xf32> -> vector<8x128xf32>
    %266 = arith.addf %263, %265 : vector<8x128xf32>
    %267 = vector.extract_strided_slice %266 {offsets = [0, 0], sizes = [8, 32], strides = [1, 1]} : vector<8x128xf32> to vector<8x32xf32>
    %268 = arith.negf %267 : vector<8x32xf32>
    %269 = math.exp %268 : vector<8x32xf32>
    %cst_114 = arith.constant 1.000000e+00 : f32
    %270 = vector.broadcast %cst_114 : f32 to vector<8x32xf32>
    %271 = arith.addf %270, %269 : vector<8x32xf32>
    %272 = arith.divf %270, %271 : vector<8x32xf32>
    %273 = vector.extract_strided_slice %266 {offsets = [0, 32], sizes = [8, 32], strides = [1, 1]} : vector<8x128xf32> to vector<8x32xf32>
    %274 = arith.negf %273 : vector<8x32xf32>
    %275 = math.exp %274 : vector<8x32xf32>
    %cst_115 = arith.constant 1.000000e+00 : f32
    %276 = vector.broadcast %cst_115 : f32 to vector<8x32xf32>
    %277 = arith.addf %276, %275 : vector<8x32xf32>
    %278 = arith.divf %276, %277 : vector<8x32xf32>
    %279 = vector.extract_strided_slice %266 {offsets = [0, 64], sizes = [8, 32], strides = [1, 1]} : vector<8x128xf32> to vector<8x32xf32>
    %280 = math.tanh %279 : vector<8x32xf32>
    %281 = vector.extract_strided_slice %266 {offsets = [0, 96], sizes = [8, 32], strides = [1, 1]} : vector<8x128xf32> to vector<8x32xf32>
    %282 = arith.negf %281 : vector<8x32xf32>
    %283 = math.exp %282 : vector<8x32xf32>
    %cst_116 = arith.constant 1.000000e+00 : f32
    %284 = vector.broadcast %cst_116 : f32 to vector<8x32xf32>
    %285 = arith.addf %284, %283 : vector<8x32xf32>
    %286 = arith.divf %284, %285 : vector<8x32xf32>
    %287 = arith.mulf %278, %259 : vector<8x32xf32>
    %288 = arith.mulf %272, %280 : vector<8x32xf32>
    %289 = arith.addf %287, %288 : vector<8x32xf32>
    %290 = math.tanh %289 : vector<8x32xf32>
    %291 = arith.mulf %286, %290 : vector<8x32xf32>
    %c8_i32_117 = arith.constant 8 : i32
    %292 = arith.muli %arg1, %c8_i32_117 : i32
    %293 = arith.addi %292, %c6_i32 : i32
    %c8_i32_118 = arith.constant 8 : i32
    %294 = arith.cmpi slt, %293, %c8_i32_118 : i32
    %295 = arith.select %294, %289, %259 : vector<8x32xf32>
    %c0_119 = arith.constant 0 : index
    %c0_120 = arith.constant 0 : index
    %296 = vector.load %arg10[%c0_119, %c0_120] : memref<8x32xf32, #tpu.memory_space<vmem>>, vector<8x32xf32>
    tpu.vector_store %arg10[%c0_119, %c0_120], %295 {strides = array<i32>} : memref<8x32xf32, #tpu.memory_space<vmem>>, vector<8x32xf32>,
    %297 = arith.select %294, %291, %258 : vector<8x32xf32>
    %c0_121 = arith.constant 0 : index
    %c0_122 = arith.constant 0 : index
    %298 = vector.load %arg9[%c0_121, %c0_122] : memref<8x32xf32, #tpu.memory_space<vmem>>, vector<8x32xf32>
    tpu.vector_store %arg9[%c0_121, %c0_122], %297 {strides = array<i32>} : memref<8x32xf32, #tpu.memory_space<vmem>>, vector<8x32xf32>,
    %c7_i32 = arith.constant 7 : i32
    %c0_123 = arith.constant 0 : index
    %c0_124 = arith.constant 0 : index
    %299 = vector.load %arg9[%c0_123, %c0_124] : memref<8x32xf32, #tpu.memory_space<vmem>>, vector<8x32xf32>
    %c0_125 = arith.constant 0 : index
    %c0_126 = arith.constant 0 : index
    %300 = vector.load %arg10[%c0_125, %c0_126] : memref<8x32xf32, #tpu.memory_space<vmem>>, vector<8x32xf32>
    %c8_i32_127 = arith.constant 8 : i32
    %301 = arith.muli %c7_i32, %c8_i32_127 : i32
    %302 = tpu.assume_multiple %301, 8 : i32
    %303 = arith.index_cast %302 : i32 to index
    %c0_128 = arith.constant 0 : index
    %304 = vector.load %arg11[%303, %c0_128] : memref<64x128xf32, #tpu.memory_space<vmem>>, vector<8x128xf32>
    %305 = arith.truncf %299 : vector<8x32xf32> to vector<8x32xbf16>
    %cst_129 = arith.constant dense<0.000000e+00> : vector<8x128xf32>
    %306 = tpu.matmul %305, %11, %cst_129 {dimension_numbers = #tpu.dot_dimension_numbers<[1], [0], [0], [1], [0, 0, 1, 1], [], []>} : vector<8x32xbf16>, vector<32x128xbf16>, vector<8x128xf32> -> vector<8x128xf32>
    %307 = arith.addf %304, %306 : vector<8x128xf32>
    %308 = vector.extract_strided_slice %307 {offsets = [0, 0], sizes = [8, 32], strides = [1, 1]} : vector<8x128xf32> to vector<8x32xf32>
    %309 = arith.negf %308 : vector<8x32xf32>
    %310 = math.exp %309 : vector<8x32xf32>
    %cst_130 = arith.constant 1.000000e+00 : f32
    %311 = vector.broadcast %cst_130 : f32 to vector<8x32xf32>
    %312 = arith.addf %311, %310 : vector<8x32xf32>
    %313 = arith.divf %311, %312 : vector<8x32xf32>
    %314 = vector.extract_strided_slice %307 {offsets = [0, 32], sizes = [8, 32], strides = [1, 1]} : vector<8x128xf32> to vector<8x32xf32>
    %315 = arith.negf %314 : vector<8x32xf32>
    %316 = math.exp %315 : vector<8x32xf32>
    %cst_131 = arith.constant 1.000000e+00 : f32
    %317 = vector.broadcast %cst_131 : f32 to vector<8x32xf32>
    %318 = arith.addf %317, %316 : vector<8x32xf32>
    %319 = arith.divf %317, %318 : vector<8x32xf32>
    %320 = vector.extract_strided_slice %307 {offsets = [0, 64], sizes = [8, 32], strides = [1, 1]} : vector<8x128xf32> to vector<8x32xf32>
    %321 = math.tanh %320 : vector<8x32xf32>
    %322 = vector.extract_strided_slice %307 {offsets = [0, 96], sizes = [8, 32], strides = [1, 1]} : vector<8x128xf32> to vector<8x32xf32>
    %323 = arith.negf %322 : vector<8x32xf32>
    %324 = math.exp %323 : vector<8x32xf32>
    %cst_132 = arith.constant 1.000000e+00 : f32
    %325 = vector.broadcast %cst_132 : f32 to vector<8x32xf32>
    %326 = arith.addf %325, %324 : vector<8x32xf32>
    %327 = arith.divf %325, %326 : vector<8x32xf32>
    %328 = arith.mulf %319, %300 : vector<8x32xf32>
    %329 = arith.mulf %313, %321 : vector<8x32xf32>
    %330 = arith.addf %328, %329 : vector<8x32xf32>
    %331 = math.tanh %330 : vector<8x32xf32>
    %332 = arith.mulf %327, %331 : vector<8x32xf32>
    %c8_i32_133 = arith.constant 8 : i32
    %333 = arith.muli %arg1, %c8_i32_133 : i32
    %334 = arith.addi %333, %c7_i32 : i32
    %c8_i32_134 = arith.constant 8 : i32
    %335 = arith.cmpi slt, %334, %c8_i32_134 : i32
    %336 = arith.select %335, %330, %300 : vector<8x32xf32>
    %c0_135 = arith.constant 0 : index
    %c0_136 = arith.constant 0 : index
    %337 = vector.load %arg10[%c0_135, %c0_136] : memref<8x32xf32, #tpu.memory_space<vmem>>, vector<8x32xf32>
    tpu.vector_store %arg10[%c0_135, %c0_136], %336 {strides = array<i32>} : memref<8x32xf32, #tpu.memory_space<vmem>>, vector<8x32xf32>,
    %338 = arith.select %335, %332, %299 : vector<8x32xf32>
    %c0_137 = arith.constant 0 : index
    %c0_138 = arith.constant 0 : index
    %339 = vector.load %arg9[%c0_137, %c0_138] : memref<8x32xf32, #tpu.memory_space<vmem>>, vector<8x32xf32>
    tpu.vector_store %arg9[%c0_137, %c0_138], %338 {strides = array<i32>} : memref<8x32xf32, #tpu.memory_space<vmem>>, vector<8x32xf32>,
    %c8_i32_139 = arith.constant 8 : i32
    %c0_i32_140 = arith.constant 0 : i32
    %340 = arith.cmpi eq, %arg1, %c0_i32_140 : i32
    %341 = arith.extui %340 : i1 to i32
    %c0_i32_141 = arith.constant 0 : i32
    %342 = arith.cmpi ne, %341, %c0_i32_141 : i32
    scf.if %342 {
      %c0_142 = arith.constant 0 : index
      %c0_143 = arith.constant 0 : index
      %343 = vector.load %arg9[%c0_142, %c0_143] : memref<8x32xf32, #tpu.memory_space<vmem>>, vector<8x32xf32>
      %344 = arith.truncf %343 : vector<8x32xf32> to vector<8x32xbf16>
      %c0_144 = arith.constant 0 : index
      %c0_145 = arith.constant 0 : index
      %345 = vector.load %arg6[%c0_144, %c0_145] : memref<32x128xbf16, #tpu.memory_space<vmem>>, vector<32x128xbf16>
      %cst_146 = arith.constant dense<0.000000e+00> : vector<8x128xf32>
      %346 = tpu.matmul %344, %345, %cst_146 {dimension_numbers = #tpu.dot_dimension_numbers<[1], [0], [0], [1], [0, 0, 1, 1], [], []>} : vector<8x32xbf16>, vector<32x128xbf16>, vector<8x128xf32> -> vector<8x128xf32>
      %c0_147 = arith.constant 0 : index
      %c0_148 = arith.constant 0 : index
      %347 = vector.load %arg7[%c0_147, %c0_148] : memref<1x128xf32, #tpu.memory_space<vmem>>, vector<1x128xf32>
      %348 = vector.broadcast %347 : vector<1x128xf32> to vector<8x128xf32>
      %349 = arith.addf %346, %348 : vector<8x128xf32>
      %c0_149 = arith.constant 0 : index
      %c0_150 = arith.constant 0 : index
      %350 = vector.load %arg8[%c0_149, %c0_150] : memref<8x128xf32, #tpu.memory_space<vmem>>, vector<8x128xf32>
      tpu.vector_store %arg8[%c0_149, %c0_150], %349 {strides = array<i32>} : memref<8x128xf32, #tpu.memory_space<vmem>>, vector<8x128xf32>,
    } else {
    }
    return
  }
  func.func @transform_0(%arg0: i32, %arg1: i32) -> (i32, i32, i32) {
    %c0_i32 = arith.constant 0 : i32
    %c0_i32_0 = arith.constant 0 : i32
    return %arg1, %arg0, %c0_i32 : i32, i32, i32
  }
  func.func @transform_1(%arg0: i32, %arg1: i32) -> (i32, i32) {
    %c0_i32 = arith.constant 0 : i32
    %c0_i32_0 = arith.constant 0 : i32
    %c0_i32_1 = arith.constant 0 : i32
    return %c0_i32, %c0_i32_0 : i32, i32
  }
  func.func @transform_2(%arg0: i32, %arg1: i32) -> (i32, i32) {
    %c0_i32 = arith.constant 0 : i32
    %c0_i32_0 = arith.constant 0 : i32
    %c0_i32_1 = arith.constant 0 : i32
    return %c0_i32, %c0_i32_0 : i32, i32
  }
  func.func @transform_3(%arg0: i32, %arg1: i32) -> (i32, i32) {
    %c0_i32 = arith.constant 0 : i32
    %c0_i32_0 = arith.constant 0 : i32
    %c0_i32_1 = arith.constant 0 : i32
    return %c0_i32, %c0_i32_0 : i32, i32
  }
  func.func @transform_4(%arg0: i32, %arg1: i32) -> (i32, i32) {
    %c0_i32 = arith.constant 0 : i32
    %c0_i32_0 = arith.constant 0 : i32
    %c0_i32_1 = arith.constant 0 : i32
    return %c0_i32, %c0_i32_0 : i32, i32
  }
  func.func @transform_5(%arg0: i32, %arg1: i32) -> (i32, i32) {
    %c0_i32 = arith.constant 0 : i32
    %c0_i32_0 = arith.constant 0 : i32
    %c0_i32_1 = arith.constant 0 : i32
    return %c0_i32, %c0_i32_0 : i32, i32
  }
  func.func @transform_6(%arg0: i32, %arg1: i32) -> (i32, i32) {
    %c0_i32 = arith.constant 0 : i32
    %c0_i32_0 = arith.constant 0 : i32
    return %arg0, %c0_i32 : i32, i32
  }
}

</mosaic_0001>

<bundles_post_ra>
// kernel: tpu_custom_call.1
= control target key start
LH: loop header
LB: loop body
LE: loop exit
PB: predicated region body
PF: predicated region fallthrough
CT: control target
= control target key end

     0   :  { %11 = vsyncpa [#allocation6], 0  ;;  %s1387_s0 = inlined_call_operand.hbm [shape: bf16[8,8,16], index: 0, kind: input, shape index: {}]   ;;  %s1388_s1 = inlined_call_operand.hbm [shape: bf16[16,128], index: 1, kind: input, shape index: {}]   ;;  %s1389_s2 = inlined_call_operand.hbm [shape: bf16[32,128], index: 2, kind: input, shape index: {}]   ;;  %s1390_s3 = inlined_call_operand.vmem [shape: f32[1,128], index: 3, kind: input, shape index: {}]   ;;  %s1391_s4 = inlined_call_operand.hbm [shape: bf16[32,128], index: 4, kind: input, shape index: {}]   ;;  %s1392_s5 = inlined_call_operand.vmem [shape: f32[1,128], index: 5, kind: input, shape index: {}]   ;;  %s1393_s6 = inlined_call_operand.hbm [shape: f32[8,128], index: 6, kind: output, shape index: {}]  }
   0x1   :  { %12 = vsyncpa [#allocation9], 0 }
   0x2   :  { %13 = vsyncpa [#allocation12], 0 }
   0x3   :  { %14 = vsyncpa [#allocation7], 0  ;;  %s32_s23 = sshll.u32 %s1388_s1, 4  ;;  %s1204_s24 = smov [#allocation8]   ;;  %s33_s23 = int_to_ptr.hbm [resolvable:$true] %s32_s23 }
   0x4   :  { %s34_s25 = sshll.u32 %s1204_s24, 4  ;;  %s19_s28 = sshll.u32 %s1387_s0, 4  ;;  %s35_s25 = int_to_ptr.vmem [resolvable:$true] %s34_s25  ;;  %s20_s28 = int_to_ptr.hbm [resolvable:$true] %s19_s28 }
   0x5   :  { %s1205_s29 = smov 64   ;;  %s1206_s30 = smov 4  }
   0x6   :  { %40 = dma.hbm_to_vmem [thread:$0]  %s33_s23, 128, %s35_s25, [#allocation9], %s1205_s29, %s1205_s29, %s1206_s30  }
   0x7   :  { %s1207_s7 = smov [#allocation5]   ;;  %s45_s1 = sshll.u32 %s1389_s2, 4  ;;  %s46_s1 = int_to_ptr.hbm [resolvable:$true] %s45_s1 }
   0x8   :  { %s21_s8 = sshll.u32 %s1207_s7, 4  ;;  %s60_s0 = sshll.u32 %s1391_s4, 4  ;;  %s22_s8 = int_to_ptr.vmem [resolvable:$true] %s21_s8  ;;  %s61_s0 = int_to_ptr.hbm [resolvable:$true] %s60_s0 }
   0x9   :  { %27 = dma.hbm_to_vmem [thread:$0]  %s20_s28, 512, %s22_s8, [#allocation6], %s1205_s29, %s1205_s29, %s1206_s30  }
   0xa   :  { %s1208_s13 = smov [#allocation10]   ;;  %s1209_s15 = smov [#allocation11]  }
   0xb   :  { %s47_s14 = sshll.u32 %s1208_s13, 4  ;;  %s62_s16 = sshll.u32 %s1209_s15, 4  ;;  %s48_s14 = int_to_ptr.vmem [resolvable:$true] %s47_s14  ;;  %s63_s16 = int_to_ptr.vmem [resolvable:$true] %s62_s16 }
   0xc   :  { %53 = dma.hbm_to_vmem [thread:$0]  %s46_s1, 256, %s48_s14, [#allocation9], %s1205_s29, %s1205_s29, %s1206_s30  }
   0xd   :  { %68 = dma.hbm_to_vmem [thread:$0]  %s61_s0, 256, %s63_s16, [#allocation12], %s1205_s29, %s1205_s29, %s1206_s30  }
   0xe   :  { %1196 = dma.done.wait [#allocation6], 512  }
   0xf   :  { %1197 = vsyncadd [#allocation6], 4294966784 }
  0x10   :  { %1198 = dma.done.wait [#allocation9], 384  }
  0x11   :  { %1199 = vsyncadd [#allocation9], 4294966912 }
  0x12   :  { %1200 = dma.done.wait [#allocation12], 256  }
  0x13   :  { %1201 = vsyncadd [#allocation12], 4294967040  ;;  %vm92_vm0 = vcmask 261120   ;;  %v1210_v0 = vmov 0.0   ;;  %v995_v1 = vld [vmem:[#allocation8] sm:$0xff]  ;;  %v1271_v2 = vld [vmem:[#allocation10 + $0x8] sm:$0xff] }
  0x14   :  { %93 = vst.msk [vmem:[#allocation2] sm:$0xff] %vm92_vm0, %v1210_v0  ;;  %v991_v3 = vld [vmem:[#allocation5] sm:$0xff]  ;;  %155 = vmatpush.bf16.msra.mxu0 %v995_v1  ;;  %215 = vmatpush.bf16.msra.mxu1 %v1271_v2  ;;  %vm135_vm1 = vcmask 130048   ;;  %v1274_v4 = vld [vmem:[#allocation10] sm:$0xff]  ;;  %v1294_v7 = vld [vmem:[%s1390_s3] ss:$0 sm:$0xff] }
  0x15   :  { %94 = vst.msk [vmem:[#allocation3] sm:$0xff] %vm92_vm0, %v1210_v0  ;;  %299 = vmatpush.bf16.msra.mxu2 %v1271_v2  ;;  %383 = vmatpush.bf16.msra.mxu3 %v1271_v2  ;;  %s1211_s17 = smov 32   ;;  %s1212_s3 = smov 96  }
  0x16   :  { %s1213_s20 = smov [#allocation13]   ;;  %s922_s24 = sshll.u32 %s1393_s6, 4  ;;  %s923_s24 = int_to_ptr.hbm [resolvable:$true] %s922_s24 }
  0x17   :  { %954 = vmatmul.msk.bf16.vlgmr.msra.gmra.mxu0 %vm135_vm1, %v991_v3  ;;  %s920_s21 = sshll.u32 %s1213_s20, 4  ;;  %s921_s21 = int_to_ptr.vmem [resolvable:$true] %s920_s21 }
  0x18   :  { %216 = vmatpush.bf16.msra.mxu1 %v1274_v4 }
  0x19   :  { %300 = vmatpush.bf16.msra.mxu2 %v1274_v4  ;;  %384 = vmatpush.bf16.msra.mxu3 %v1274_v4 }
  0x1b   :  { %v189_v5 = vld [vmem:[#allocation2] sm:$0xff] }
  0x1c   :  { %v192_v6 = vpack.c.bf16 %v189_v5, %v189_v5  ;;  %467 = vmatpush.bf16.msrb.mxu1 %v1271_v2  ;;  %v190_v14 = vld [vmem:[#allocation3] sm:$0xff] }
  0x1d   :  { %551 = vmatpush.bf16.msrb.mxu2 %v1271_v2  ;;  %635 = vmatpush.bf16.msrb.mxu3 %v1271_v2 }
  0x1e   :  { %966 = vmatmul.msk.bf16.vlgmr.msra.gmra.mxu1 %vm92_vm0, %v192_v6 }
  0x20   :  { %468 = vmatpush.bf16.msrb.mxu1 %v1274_v4 }
  0x21   :  { %552 = vmatpush.bf16.msrb.mxu2 %v1274_v4  ;;  %636 = vmatpush.bf16.msrb.mxu3 %v1274_v4 }
  0x24   :  { %719 = vmatpush.bf16.msra.mxu1 %v1271_v2 }
  0x28   :  { %720 = vmatpush.bf16.msra.mxu1 %v1274_v4 }
  0x94   :  { %v157_v8 = vpop.f32.mrf.mxu0 }
  0x95   :  { %v158_v9 = vadd.f32 %v1294_v7, %v157_v8 }
  0x9b   :  { %v218_v10 = vpop.f32.mrf.mxu1 }
  0x9c   :  { %v222_v11 = vadd.f32 %v218_v10, %v158_v9  ;;  %v159_v42 = vpop.f32.mrf.mxu0  ;;  %v992_v9 = vld [vmem:[#allocation5 + $0x8] sm:$0xff] }
  0x9d   :  { %v160_v43 = vadd.f32 %v1294_v7, %v159_v42  ;;  %955 = vmatmul.msk.bf16.gmra.mxu0 %vm135_vm1, %v992_v9 }
  0x9e   :  { %1012 = vtanh.f32 %v222_v11  ;;  %v967_v15 = vmul.f32 -1.442695, %v222_v11 }
  0xa0   :  { %1014 = vpow2.f32 %v967_v15 }
  0xa3   :  { %v220_v12 = vpop.f32.mrf.mxu1 }
  0xa4   :  { %v1013_v13 = vpop.eup %1012 }
  0xa5   :  { %249 = vrot.lane.b32.xlu0 %v1013_v13, %s1205_s29 }
  0xa6   :  { %v1015_v16 = vpop.eup %1014 }
  0xa7   :  { %v226_v17 = vadd.f32 1.0, %v1015_v16 }
  0xa9   :  { %1016 = vrcp.f32 %v226_v17  ;;  %v238_v23 = vand.u32 2147483648, %v226_v17  ;;  %vm232_vm3 = vweird.f32 %v226_v17  ;;  %v236_v24 = vand.u32 2147483647, %v226_v17 }
  0xab   :  { %v239_v26 = vor.u32 1.1754944e-38, %v238_v23  ;;  %vm237_vm5 = vcmp.eq.f32.partialorder %v236_v24, 8.507059e+37 }
  0xad   :  { %244 = vrot.lane.b32.xlu0 %v190_v14, %s1211_s17 }
  0xaf   :  { %v1017_v18 = vpop.eup %1016 }
  0xb0   :  { %v228_v19 = vmul.f32 %v1017_v18, %v226_v17  ;;  %vm233_vm2 = vweird.f32 %v1017_v18 }
  0xb1   :  { %vm234_vm4 = vmor %vm232_vm3, %vm233_vm2 }
  0xb2   :  { %v229_v20 = vsub.f32 1.0, %v228_v19 }
  0xb4   :  { %v230_v21 = vmul.f32 %v1017_v18, %v229_v20 }
  0xb6   :  { %v231_v22 = vadd.f32 %v1017_v18, %v230_v21 }
  0xb8   :  { %v235_v25 = vsel %vm234_vm4, %v1017_v18, %v231_v22 }
  0xb9   :  { %v240_v28 = vsel %vm237_vm5, %v239_v26, %v235_v25 }
 0x117   :  { %v250_v27 = vpop.permute.xlu0 %249 }
 0x118   :  { %v252_v29 = vmul.f32 %v250_v27, %v240_v28 }
 0x11a   :  { %254 = vrot.lane.b32.xlu1 %v252_v29, %s1211_s17  ;;  %v162_v13 = vpop.f32.mrf.mxu0 }
 0x11b   :  { %v163_v14 = vadd.f32 %v1294_v7, %v162_v13  ;;  %v993_v13 = vld [vmem:[#allocation5 + $0x10] sm:$0xff] }
 0x11c   :  { %956 = vmatmul.msk.bf16.gmra.mxu0 %vm135_vm1, %v993_v13 }
 0x11f   :  { %v245_v30 = vpop.permute.xlu0 %244 }
 0x120   :  { %v247_v31 = vmul.f32 %v245_v30, %v240_v28 }
 0x18c   :  { %v255_v32 = vpop.permute.xlu1 %254 }
 0x18d   :  { %v257_v33 = vadd.f32 %v255_v32, %v247_v31 }
 0x18f   :  { %1018 = vtanh.f32 %v257_v33 }
 0x195   :  { %v1019_v34 = vpop.eup %1018 }
 0x196   :  { %260 = vrot.lane.b32.xlu1 %v1019_v34, %s1205_s29 }
 0x208   :  { %v261_v35 = vpop.permute.xlu1 %260 }
 0x209   :  { %v263_v36 = vmul.f32 %v261_v35, %v240_v28 }
 0x20b   :  { %281 = vrot.lane.b32.xlu2 %v263_v36, %s1211_s17 }
 0x213   :  { %271 = vrot.lane.b32.xlu2 %v257_v33, %s1212_s3 }
 0x265   :  { %v282_v37 = vpop.permute.xlu2 %281 }
 0x266   :  { %284 = vst.msk [vmem:[#allocation2] sm:$0xff] %vm92_vm0, %v282_v37 }
 0x26d   :  { %v272_v38 = vpop.permute.xlu2 %271  ;;  %v285_v39 = vld [vmem:[#allocation2] sm:$0xff] }
 0x26e   :  { %274 = vst.msk [vmem:[#allocation3] sm:$0xff] %vm92_vm0, %v272_v38  ;;  %v289_v40 = vpack.c.bf16 %v285_v39, %v285_v39 }
 0x270   :  { %968 = vmatmul.msk.bf16.vlgmr.msra.gmra.mxu2 %vm92_vm0, %v289_v40 }
 0x271   :  { %803 = vmatpush.bf16.msra.mxu2 %v1271_v2 }
 0x275   :  { %v286_v41 = vld [vmem:[#allocation3] sm:$0xff]  ;;  %804 = vmatpush.bf16.msra.mxu2 %v1274_v4 }
 0x276   :  { %328 = vrot.lane.b32.xlu1 %v286_v41, %s1211_s17 }
 0x2e8   :  { %v329_v63 = vpop.permute.xlu1 %328 }
 0x2f3   :  { %v302_v44 = vpop.f32.mrf.mxu2 }
 0x2f4   :  { %v306_v45 = vadd.f32 %v302_v44, %v160_v43 }
 0x2f6   :  { %1020 = vtanh.f32 %v306_v45  ;;  %v969_v48 = vmul.f32 -1.442695, %v306_v45 }
 0x2f8   :  { %1022 = vpow2.f32 %v969_v48 }
 0x2fb   :  { %v304_v46 = vpop.f32.mrf.mxu2 }
 0x2fc   :  { %v1021_v47 = vpop.eup %1020  ;;  %v164_v46 = vpop.f32.mrf.mxu0 }
 0x2fd   :  { %333 = vrot.lane.b32.xlu0 %v1021_v47, %s1205_s29  ;;  %v165_v47 = vadd.f32 %v1294_v7, %v164_v46 }
 0x2fe   :  { %v1023_v49 = vpop.eup %1022 }
 0x2ff   :  { %v310_v50 = vadd.f32 1.0, %v1023_v49 }
 0x301   :  { %1024 = vrcp.f32 %v310_v50  ;;  %v322_v56 = vand.u32 2147483648, %v310_v50  ;;  %vm316_vm7 = vweird.f32 %v310_v50  ;;  %v320_v57 = vand.u32 2147483647, %v310_v50 }
 0x303   :  { %v323_v59 = vor.u32 1.1754944e-38, %v322_v56  ;;  %vm321_vm9 = vcmp.eq.f32.partialorder %v320_v57, 8.507059e+37 }
 0x307   :  { %v1025_v51 = vpop.eup %1024 }
 0x308   :  { %v312_v52 = vmul.f32 %v1025_v51, %v310_v50  ;;  %vm317_vm6 = vweird.f32 %v1025_v51 }
 0x309   :  { %vm318_vm8 = vmor %vm316_vm7, %vm317_vm6 }
 0x30a   :  { %v313_v53 = vsub.f32 1.0, %v312_v52 }
 0x30c   :  { %v314_v54 = vmul.f32 %v1025_v51, %v313_v53 }
 0x30e   :  { %v315_v55 = vadd.f32 %v1025_v51, %v314_v54 }
 0x310   :  { %v319_v58 = vsel %vm318_vm8, %v1025_v51, %v315_v55 }
 0x311   :  { %v324_v61 = vsel %vm321_vm9, %v323_v59, %v319_v58 }
 0x312   :  { %v331_v0 = vmul.f32 %v329_v63, %v324_v61 }
 0x36f   :  { %v334_v60 = vpop.permute.xlu0 %333 }
 0x370   :  { %v336_v62 = vmul.f32 %v334_v60, %v324_v61 }
 0x372   :  { %338 = vrot.lane.b32.xlu2 %v336_v62, %s1211_s17 }
 0x3cc   :  { %v339_v1 = vpop.permute.xlu2 %338 }
 0x3cd   :  { %v341_v2 = vadd.f32 %v339_v1, %v331_v0 }
 0x3cf   :  { %1026 = vtanh.f32 %v341_v2  ;;  %355 = vrot.lane.b32.xlu2 %v341_v2, %s1212_s3 }
 0x3d5   :  { %v1027_v3 = vpop.eup %1026 }
 0x3d6   :  { %344 = vrot.lane.b32.xlu0 %v1027_v3, %s1205_s29 }
 0x429   :  { %v356_v4 = vpop.permute.xlu2 %355 }
 0x42a   :  { %358 = vst.msk [vmem:[#allocation3] sm:$0xff] %vm92_vm0, %v356_v4 }
 0x431   :  { %v370_v8 = vld [vmem:[#allocation3] sm:$0xff] }
 0x448   :  { %v345_v5 = vpop.permute.xlu0 %344 }
 0x449   :  { %v347_v6 = vmul.f32 %v345_v5, %v324_v61 }
 0x44b   :  { %365 = vrot.lane.b32.xlu1 %v347_v6, %s1211_s17 }
 0x453   :  { %412 = vrot.lane.b32.xlu1 %v370_v8, %s1211_s17 }
 0x4bd   :  { %v366_v10 = vpop.permute.xlu1 %365 }
 0x4be   :  { %368 = vst.msk [vmem:[#allocation2] sm:$0xff] %vm92_vm0, %v366_v10 }
 0x4c5   :  { %v369_v11 = vld [vmem:[#allocation2] sm:$0xff]  ;;  %v413_v34 = vpop.permute.xlu1 %412 }
 0x4c6   :  { %v373_v12 = vpack.c.bf16 %v369_v11, %v369_v11 }
 0x4c8   :  { %970 = vmatmul.msk.bf16.vlgmr.msra.gmra.mxu3 %vm92_vm0, %v373_v12 }
 0x54b   :  { %v386_v15 = vpop.f32.mrf.mxu3 }
 0x54c   :  { %v390_v16 = vadd.f32 %v386_v15, %v163_v14 }
 0x54e   :  { %1028 = vtanh.f32 %v390_v16  ;;  %v971_v19 = vmul.f32 -1.442695, %v390_v16 }
 0x550   :  { %1030 = vpow2.f32 %v971_v19 }
 0x553   :  { %v388_v17 = vpop.f32.mrf.mxu3 }
 0x554   :  { %v1029_v18 = vpop.eup %1028  ;;  %v167_v17 = vpop.f32.mrf.mxu0 }
 0x555   :  { %417 = vrot.lane.b32.xlu0 %v1029_v18, %s1205_s29  ;;  %v168_v18 = vadd.f32 %v1294_v7, %v167_v17  ;;  %v994_v17 = vld [vmem:[#allocation5 + $0x18] sm:$0xff] }
 0x556   :  { %v1031_v20 = vpop.eup %1030  ;;  %957 = vmatmul.msk.bf16.gmra.mxu0 %vm135_vm1, %v994_v17  ;;  %v999_v17 = vld [vmem:[#allocation11 + $0x8] sm:$0xff] }
 0x557   :  { %v394_v21 = vadd.f32 1.0, %v1031_v20  ;;  %907 = vmatpush.bf16.msra.mxu3 %v999_v17 }
 0x559   :  { %1032 = vrcp.f32 %v394_v21  ;;  %v406_v27 = vand.u32 2147483648, %v394_v21  ;;  %vm400_vm11 = vweird.f32 %v394_v21  ;;  %v404_v28 = vand.u32 2147483647, %v394_v21 }
 0x55b   :  { %v407_v30 = vor.u32 1.1754944e-38, %v406_v27  ;;  %vm405_vm13 = vcmp.eq.f32.partialorder %v404_v28, 8.507059e+37 }
 0x55f   :  { %v1033_v22 = vpop.eup %1032 }
 0x560   :  { %v396_v23 = vmul.f32 %v1033_v22, %v394_v21  ;;  %vm401_vm10 = vweird.f32 %v1033_v22 }
 0x561   :  { %vm402_vm12 = vmor %vm400_vm11, %vm401_vm10 }
 0x562   :  { %v397_v24 = vsub.f32 1.0, %v396_v23 }
 0x564   :  { %v398_v25 = vmul.f32 %v1033_v22, %v397_v24 }
 0x566   :  { %v399_v26 = vadd.f32 %v1033_v22, %v398_v25 }
 0x568   :  { %v403_v29 = vsel %vm402_vm12, %v1033_v22, %v399_v26 }
 0x569   :  { %v408_v32 = vsel %vm405_vm13, %v407_v30, %v403_v29 }
 0x56a   :  { %v415_v35 = vmul.f32 %v413_v34, %v408_v32 }
 0x5c7   :  { %v418_v31 = vpop.permute.xlu0 %417 }
 0x5c8   :  { %v420_v33 = vmul.f32 %v418_v31, %v408_v32 }
 0x5ca   :  { %422 = vrot.lane.b32.xlu2 %v420_v33, %s1211_s17 }
 0x624   :  { %v423_v36 = vpop.permute.xlu2 %422 }
 0x625   :  { %v425_v37 = vadd.f32 %v423_v36, %v415_v35 }
 0x627   :  { %1034 = vtanh.f32 %v425_v37  ;;  %439 = vrot.lane.b32.xlu2 %v425_v37, %s1212_s3 }
 0x62d   :  { %v1035_v38 = vpop.eup %1034 }
 0x62e   :  { %428 = vrot.lane.b32.xlu0 %v1035_v38, %s1205_s29 }
 0x681   :  { %v440_v39 = vpop.permute.xlu2 %439 }
 0x682   :  { %442 = vst.msk [vmem:[#allocation3] sm:$0xff] %vm92_vm0, %v440_v39 }
 0x689   :  { %v454_v42 = vld [vmem:[#allocation3] sm:$0xff] }
 0x6a0   :  { %v429_v40 = vpop.permute.xlu0 %428 }
 0x6a1   :  { %v431_v41 = vmul.f32 %v429_v40, %v408_v32 }
 0x6a3   :  { %449 = vrot.lane.b32.xlu1 %v431_v41, %s1211_s17 }
 0x6ab   :  { %496 = vrot.lane.b32.xlu1 %v454_v42, %s1211_s17 }
 0x715   :  { %v450_v43 = vpop.permute.xlu1 %449 }
 0x716   :  { %452 = vst.msk [vmem:[#allocation2] sm:$0xff] %vm92_vm0, %v450_v43 }
 0x71d   :  { %v453_v44 = vld [vmem:[#allocation2] sm:$0xff]  ;;  %v497_v3 = vpop.permute.xlu1 %496 }
 0x71e   :  { %v457_v45 = vpack.c.bf16 %v453_v44, %v453_v44 }
 0x720   :  { %972 = vmatmul.msk.bf16.vlgmr.msrb.gmra.mxu1 %vm92_vm0, %v457_v45 }
 0x79d   :  { %v470_v48 = vpop.f32.mrf.mxu1 }
 0x79e   :  { %v474_v49 = vadd.f32 %v470_v48, %v165_v47 }
 0x7a0   :  { %1036 = vtanh.f32 %v474_v49  ;;  %v973_v52 = vmul.f32 -1.442695, %v474_v49 }
 0x7a2   :  { %1038 = vpow2.f32 %v973_v52 }
 0x7a5   :  { %v472_v50 = vpop.f32.mrf.mxu1 }
 0x7a6   :  { %v1037_v51 = vpop.eup %1036  ;;  %v169_v50 = vpop.f32.mrf.mxu0 }
 0x7a7   :  { %501 = vrot.lane.b32.xlu0 %v1037_v51, %s1205_s29  ;;  %v170_v51 = vadd.f32 %v1294_v7, %v169_v50 }
 0x7a8   :  { %v1039_v53 = vpop.eup %1038 }
 0x7a9   :  { %v478_v54 = vadd.f32 1.0, %v1039_v53 }
 0x7ab   :  { %1040 = vrcp.f32 %v478_v54  ;;  %v490_v60 = vand.u32 2147483648, %v478_v54  ;;  %vm484_vm15 = vweird.f32 %v478_v54  ;;  %v488_v61 = vand.u32 2147483647, %v478_v54 }
 0x7ad   :  { %v491_v63 = vor.u32 1.1754944e-38, %v490_v60  ;;  %vm489_vm3 = vcmp.eq.f32.partialorder %v488_v61, 8.507059e+37 }
 0x7b1   :  { %v1041_v55 = vpop.eup %1040 }
 0x7b2   :  { %v480_v56 = vmul.f32 %v1041_v55, %v478_v54  ;;  %vm485_vm14 = vweird.f32 %v1041_v55 }
 0x7b3   :  { %vm486_vm2 = vmor %vm484_vm15, %vm485_vm14 }
 0x7b4   :  { %v481_v57 = vsub.f32 1.0, %v480_v56 }
 0x7b6   :  { %v482_v58 = vmul.f32 %v1041_v55, %v481_v57 }
 0x7b8   :  { %v483_v59 = vadd.f32 %v1041_v55, %v482_v58 }
 0x7ba   :  { %v487_v62 = vsel %vm486_vm2, %v1041_v55, %v483_v59 }
 0x7bb   :  { %v492_v1 = vsel %vm489_vm3, %v491_v63, %v487_v62 }
 0x7bc   :  { %v499_v4 = vmul.f32 %v497_v3, %v492_v1 }
 0x819   :  { %v502_v0 = vpop.permute.xlu0 %501 }
 0x81a   :  { %v504_v2 = vmul.f32 %v502_v0, %v492_v1 }
 0x81c   :  { %506 = vrot.lane.b32.xlu2 %v504_v2, %s1211_s17 }
 0x876   :  { %v507_v5 = vpop.permute.xlu2 %506 }
 0x877   :  { %v509_v6 = vadd.f32 %v507_v5, %v499_v4 }
 0x879   :  { %1042 = vtanh.f32 %v509_v6  ;;  %523 = vrot.lane.b32.xlu2 %v509_v6, %s1212_s3 }
 0x87f   :  { %v1043_v8 = vpop.eup %1042 }
 0x880   :  { %512 = vrot.lane.b32.xlu0 %v1043_v8, %s1205_s29 }
 0x8d3   :  { %v524_v9 = vpop.permute.xlu2 %523 }
 0x8d4   :  { %526 = vst.msk [vmem:[#allocation3] sm:$0xff] %vm92_vm0, %v524_v9 }
 0x8db   :  { %v538_v12 = vld [vmem:[#allocation3] sm:$0xff] }
 0x8f2   :  { %v513_v10 = vpop.permute.xlu0 %512 }
 0x8f3   :  { %v515_v11 = vmul.f32 %v513_v10, %v492_v1 }
 0x8f5   :  { %533 = vrot.lane.b32.xlu1 %v515_v11, %s1211_s17 }
 0x8fd   :  { %580 = vrot.lane.b32.xlu1 %v538_v12, %s1211_s17 }
 0x967   :  { %v534_v14 = vpop.permute.xlu1 %533 }
 0x968   :  { %536 = vst.msk [vmem:[#allocation2] sm:$0xff] %vm92_vm0, %v534_v14 }
 0x96f   :  { %v537_v15 = vld [vmem:[#allocation2] sm:$0xff]  ;;  %v581_v38 = vpop.permute.xlu1 %580 }
 0x970   :  { %v541_v16 = vpack.c.bf16 %v537_v15, %v537_v15 }
 0x972   :  { %974 = vmatmul.msk.bf16.vlgmr.msrb.gmra.mxu2 %vm92_vm0, %v541_v16 }
 0x9f5   :  { %v554_v19 = vpop.f32.mrf.mxu2 }
 0x9f6   :  { %v558_v20 = vadd.f32 %v554_v19, %v168_v18 }
 0x9f8   :  { %1044 = vtanh.f32 %v558_v20  ;;  %v975_v23 = vmul.f32 -1.442695, %v558_v20 }
 0x9fa   :  { %1046 = vpow2.f32 %v975_v23 }
 0x9fd   :  { %v556_v21 = vpop.f32.mrf.mxu2 }
 0x9fe   :  { %v1045_v22 = vpop.eup %1044  ;;  %v172_v21 = vpop.f32.mrf.mxu0 }
 0x9ff   :  { %585 = vrot.lane.b32.xlu0 %v1045_v22, %s1205_s29  ;;  %v173_v22 = vadd.f32 %v1294_v7, %v172_v21 }
 0xa00   :  { %v1047_v24 = vpop.eup %1046 }
 0xa01   :  { %v562_v25 = vadd.f32 1.0, %v1047_v24 }
 0xa03   :  { %1048 = vrcp.f32 %v562_v25  ;;  %v574_v31 = vand.u32 2147483648, %v562_v25  ;;  %vm568_vm5 = vweird.f32 %v562_v25  ;;  %v572_v32 = vand.u32 2147483647, %v562_v25 }
 0xa05   :  { %v575_v34 = vor.u32 1.1754944e-38, %v574_v31  ;;  %vm573_vm7 = vcmp.eq.f32.partialorder %v572_v32, 8.507059e+37 }
 0xa09   :  { %v1049_v26 = vpop.eup %1048 }
 0xa0a   :  { %v564_v27 = vmul.f32 %v1049_v26, %v562_v25  ;;  %vm569_vm4 = vweird.f32 %v1049_v26 }
 0xa0b   :  { %vm570_vm6 = vmor %vm568_vm5, %vm569_vm4 }
 0xa0c   :  { %v565_v28 = vsub.f32 1.0, %v564_v27 }
 0xa0e   :  { %v566_v29 = vmul.f32 %v1049_v26, %v565_v28 }
 0xa10   :  { %v567_v30 = vadd.f32 %v1049_v26, %v566_v29 }
 0xa12   :  { %v571_v33 = vsel %vm570_vm6, %v1049_v26, %v567_v30 }
 0xa13   :  { %v576_v36 = vsel %vm573_vm7, %v575_v34, %v571_v33 }
 0xa14   :  { %v583_v39 = vmul.f32 %v581_v38, %v576_v36 }
 0xa71   :  { %v586_v35 = vpop.permute.xlu0 %585 }
 0xa72   :  { %v588_v37 = vmul.f32 %v586_v35, %v576_v36 }
 0xa74   :  { %590 = vrot.lane.b32.xlu2 %v588_v37, %s1211_s17 }
 0xace   :  { %v591_v40 = vpop.permute.xlu2 %590 }
 0xacf   :  { %v593_v41 = vadd.f32 %v591_v40, %v583_v39 }
 0xad1   :  { %1050 = vtanh.f32 %v593_v41  ;;  %607 = vrot.lane.b32.xlu2 %v593_v41, %s1212_s3 }
 0xad7   :  { %v1051_v42 = vpop.eup %1050 }
 0xad8   :  { %596 = vrot.lane.b32.xlu0 %v1051_v42, %s1205_s29 }
 0xb2b   :  { %v608_v43 = vpop.permute.xlu2 %607 }
 0xb2c   :  { %610 = vst.msk [vmem:[#allocation3] sm:$0xff] %vm92_vm0, %v608_v43 }
 0xb33   :  { %v622_v46 = vld [vmem:[#allocation3] sm:$0xff] }
 0xb4a   :  { %v597_v44 = vpop.permute.xlu0 %596 }
 0xb4b   :  { %v599_v45 = vmul.f32 %v597_v44, %v576_v36 }
 0xb4d   :  { %617 = vrot.lane.b32.xlu1 %v599_v45, %s1211_s17 }
 0xb55   :  { %664 = vrot.lane.b32.xlu1 %v622_v46, %s1211_s17 }
 0xbbf   :  { %v618_v47 = vpop.permute.xlu1 %617 }
 0xbc0   :  { %620 = vst.msk [vmem:[#allocation2] sm:$0xff] %vm92_vm0, %v618_v47 }
 0xbc7   :  { %v621_v48 = vld [vmem:[#allocation2] sm:$0xff]  ;;  %v665_v8 = vpop.permute.xlu1 %664 }
 0xbc8   :  { %v625_v49 = vpack.c.bf16 %v621_v48, %v621_v48 }
 0xbca   :  { %976 = vmatmul.msk.bf16.vlgmr.msrb.gmra.mxu3 %vm92_vm0, %v625_v49 }
 0xc4d   :  { %v638_v52 = vpop.f32.mrf.mxu3 }
 0xc4e   :  { %v642_v53 = vadd.f32 %v638_v52, %v170_v51 }
 0xc50   :  { %1052 = vtanh.f32 %v642_v53  ;;  %v977_v56 = vmul.f32 -1.442695, %v642_v53 }
 0xc52   :  { %1054 = vpow2.f32 %v977_v56 }
 0xc55   :  { %v640_v54 = vpop.f32.mrf.mxu3 }
 0xc56   :  { %v1053_v55 = vpop.eup %1052  ;;  %v174_v54 = vpop.f32.mrf.mxu0 }
 0xc57   :  { %669 = vrot.lane.b32.xlu0 %v1053_v55, %s1205_s29  ;;  %v175_v55 = vadd.f32 %v1294_v7, %v174_v54 }
 0xc58   :  { %v1055_v57 = vpop.eup %1054 }
 0xc59   :  { %v646_v58 = vadd.f32 1.0, %v1055_v57 }
 0xc5b   :  { %1056 = vrcp.f32 %v646_v58  ;;  %v658_v0 = vand.u32 2147483648, %v646_v58  ;;  %vm652_vm9 = vweird.f32 %v646_v58  ;;  %v656_v1 = vand.u32 2147483647, %v646_v58 }
 0xc5d   :  { %v659_v3 = vor.u32 1.1754944e-38, %v658_v0  ;;  %vm657_vm11 = vcmp.eq.f32.partialorder %v656_v1, 8.507059e+37 }
 0xc61   :  { %v1057_v59 = vpop.eup %1056 }
 0xc62   :  { %v648_v60 = vmul.f32 %v1057_v59, %v646_v58  ;;  %vm653_vm8 = vweird.f32 %v1057_v59 }
 0xc63   :  { %vm654_vm10 = vmor %vm652_vm9, %vm653_vm8 }
 0xc64   :  { %v649_v61 = vsub.f32 1.0, %v648_v60 }
 0xc66   :  { %v650_v62 = vmul.f32 %v1057_v59, %v649_v61 }
 0xc68   :  { %v651_v63 = vadd.f32 %v1057_v59, %v650_v62 }
 0xc6a   :  { %v655_v2 = vsel %vm654_vm10, %v1057_v59, %v651_v63 }
 0xc6b   :  { %v660_v5 = vsel %vm657_vm11, %v659_v3, %v655_v2 }
 0xc6c   :  { %v667_v9 = vmul.f32 %v665_v8, %v660_v5 }
 0xcc9   :  { %v670_v4 = vpop.permute.xlu0 %669 }
 0xcca   :  { %v672_v6 = vmul.f32 %v670_v4, %v660_v5 }
 0xccc   :  { %674 = vrot.lane.b32.xlu2 %v672_v6, %s1211_s17 }
 0xd26   :  { %v675_v10 = vpop.permute.xlu2 %674 }
 0xd27   :  { %v677_v11 = vadd.f32 %v675_v10, %v667_v9 }
 0xd29   :  { %1058 = vtanh.f32 %v677_v11  ;;  %691 = vrot.lane.b32.xlu2 %v677_v11, %s1212_s3 }
 0xd2f   :  { %v1059_v12 = vpop.eup %1058 }
 0xd30   :  { %680 = vrot.lane.b32.xlu0 %v1059_v12, %s1205_s29 }
 0xd83   :  { %v692_v13 = vpop.permute.xlu2 %691 }
 0xd84   :  { %694 = vst.msk [vmem:[#allocation3] sm:$0xff] %vm92_vm0, %v692_v13 }
 0xd8b   :  { %v706_v16 = vld [vmem:[#allocation3] sm:$0xff] }
 0xda2   :  { %v681_v14 = vpop.permute.xlu0 %680 }
 0xda3   :  { %v683_v15 = vmul.f32 %v681_v14, %v660_v5 }
 0xda5   :  { %701 = vrot.lane.b32.xlu1 %v683_v15, %s1211_s17 }
 0xdad   :  { %748 = vrot.lane.b32.xlu1 %v706_v16, %s1211_s17 }
 0xe17   :  { %v702_v18 = vpop.permute.xlu1 %701 }
 0xe18   :  { %704 = vst.msk [vmem:[#allocation2] sm:$0xff] %vm92_vm0, %v702_v18 }
 0xe1f   :  { %v705_v19 = vld [vmem:[#allocation2] sm:$0xff]  ;;  %v749_v42 = vpop.permute.xlu1 %748 }
 0xe20   :  { %v709_v20 = vpack.c.bf16 %v705_v19, %v705_v19 }
 0xe22   :  { %978 = vmatmul.msk.bf16.vlgmr.msra.gmra.mxu1 %vm92_vm0, %v709_v20  ;;  %v998_v20 = vld [vmem:[#allocation11] sm:$0xff] }
 0xe23   :  { %908 = vmatpush.bf16.msra.mxu3 %v998_v20 }
 0xe9f   :  { %v722_v23 = vpop.f32.mrf.mxu1 }
 0xea0   :  { %v726_v24 = vadd.f32 %v722_v23, %v173_v22 }
 0xea2   :  { %1060 = vtanh.f32 %v726_v24  ;;  %v979_v27 = vmul.f32 -1.442695, %v726_v24  ;;  %v1011_v24 = vld [vmem:[%s1392_s5] ss:$0 sm:$0xff] }
 0xea4   :  { %1062 = vpow2.f32 %v979_v27 }
 0xea7   :  { %v724_v25 = vpop.f32.mrf.mxu1 }
 0xea8   :  { %v1061_v26 = vpop.eup %1060 }
 0xea9   :  { %753 = vrot.lane.b32.xlu0 %v1061_v26, %s1205_s29 }
 0xeaa   :  { %v1063_v28 = vpop.eup %1062 }
 0xeab   :  { %v730_v29 = vadd.f32 1.0, %v1063_v28 }
 0xead   :  { %1064 = vrcp.f32 %v730_v29  ;;  %v742_v35 = vand.u32 2147483648, %v730_v29  ;;  %vm736_vm12 = vweird.f32 %v730_v29  ;;  %v740_v36 = vand.u32 2147483647, %v730_v29 }
 0xeaf   :  { %v743_v38 = vor.u32 1.1754944e-38, %v742_v35  ;;  %vm741_vm14 = vcmp.eq.f32.partialorder %v740_v36, 8.507059e+37 }
 0xeb3   :  { %v1065_v30 = vpop.eup %1064 }
 0xeb4   :  { %v732_v31 = vmul.f32 %v1065_v30, %v730_v29  ;;  %vm737_vm1 = vweird.f32 %v1065_v30 }
 0xeb5   :  { %vm738_vm13 = vmor %vm736_vm12, %vm737_vm1 }
 0xeb6   :  { %v733_v32 = vsub.f32 1.0, %v732_v31 }
 0xeb8   :  { %v734_v33 = vmul.f32 %v1065_v30, %v733_v32 }
 0xeba   :  { %v735_v34 = vadd.f32 %v1065_v30, %v734_v33 }
 0xebc   :  { %v739_v37 = vsel %vm738_vm13, %v1065_v30, %v735_v34 }
 0xebd   :  { %v744_v40 = vsel %vm741_vm14, %v743_v38, %v739_v37 }
 0xebe   :  { %v751_v43 = vmul.f32 %v749_v42, %v744_v40 }
 0xf1b   :  { %v754_v39 = vpop.permute.xlu0 %753 }
 0xf1c   :  { %v756_v41 = vmul.f32 %v754_v39, %v744_v40 }
 0xf1e   :  { %758 = vrot.lane.b32.xlu2 %v756_v41, %s1211_s17 }
 0xf78   :  { %v759_v44 = vpop.permute.xlu2 %758 }
 0xf79   :  { %v761_v45 = vadd.f32 %v759_v44, %v751_v43 }
 0xf7b   :  { %1066 = vtanh.f32 %v761_v45  ;;  %775 = vrot.lane.b32.xlu2 %v761_v45, %s1212_s3 }
 0xf81   :  { %v1067_v46 = vpop.eup %1066 }
 0xf82   :  { %764 = vrot.lane.b32.xlu0 %v1067_v46, %s1205_s29 }
 0xfd5   :  { %v776_v47 = vpop.permute.xlu2 %775 }
 0xfd6   :  { %778 = vst.msk [vmem:[#allocation3] sm:$0xff] %vm92_vm0, %v776_v47 }
 0xfdd   :  { %v790_v50 = vld [vmem:[#allocation3] sm:$0xff] }
 0xff4   :  { %v765_v48 = vpop.permute.xlu0 %764 }
 0xff5   :  { %v767_v49 = vmul.f32 %v765_v48, %v744_v40 }
 0xff7   :  { %785 = vrot.lane.b32.xlu1 %v767_v49, %s1211_s17 }
 0xfff   :  { %832 = vrot.lane.b32.xlu1 %v790_v50, %s1211_s17 }
0x1069   :  { %v786_v51 = vpop.permute.xlu1 %785 }
0x106a   :  { %788 = vst.msk [vmem:[#allocation2] sm:$0xff] %vm92_vm0, %v786_v51 }
0x1071   :  { %v789_v52 = vld [vmem:[#allocation2] sm:$0xff]  ;;  %v833_v11 = vpop.permute.xlu1 %832 }
0x1072   :  { %v793_v53 = vpack.c.bf16 %v789_v52, %v789_v52 }
0x1074   :  { %980 = vmatmul.msk.bf16.vlgmr.msra.gmra.mxu2 %vm92_vm0, %v793_v53 }
0x10f7   :  { %v806_v56 = vpop.f32.mrf.mxu2 }
0x10f8   :  { %v810_v57 = vadd.f32 %v806_v56, %v175_v55 }
0x10fa   :  { %1068 = vtanh.f32 %v810_v57  ;;  %v981_v60 = vmul.f32 -1.442695, %v810_v57 }
0x10fc   :  { %1070 = vpow2.f32 %v981_v60 }
0x10ff   :  { %v808_v58 = vpop.f32.mrf.mxu2 }
0x1100   :  { %v1069_v59 = vpop.eup %1068 }
0x1101   :  { %837 = vrot.lane.b32.xlu0 %v1069_v59, %s1205_s29 }
0x1102   :  { %v1071_v61 = vpop.eup %1070 }
0x1103   :  { %v814_v62 = vadd.f32 1.0, %v1071_v61 }
0x1105   :  { %1072 = vrcp.f32 %v814_v62  ;;  %v826_v4 = vand.u32 2147483648, %v814_v62  ;;  %vm820_vm2 = vweird.f32 %v814_v62  ;;  %v824_v7 = vand.u32 2147483647, %v814_v62 }
0x1107   :  { %v827_v6 = vor.u32 1.1754944e-38, %v826_v4  ;;  %vm825_vm4 = vcmp.eq.f32.partialorder %v824_v7, 8.507059e+37 }
0x110b   :  { %v1073_v63 = vpop.eup %1072 }
0x110c   :  { %v816_v0 = vmul.f32 %v1073_v63, %v814_v62  ;;  %vm821_vm15 = vweird.f32 %v1073_v63 }
0x110d   :  { %vm822_vm3 = vmor %vm820_vm2, %vm821_vm15 }
0x110e   :  { %v817_v1 = vsub.f32 1.0, %v816_v0 }
0x1110   :  { %v818_v2 = vmul.f32 %v1073_v63, %v817_v1 }
0x1112   :  { %v819_v3 = vadd.f32 %v1073_v63, %v818_v2 }
0x1114   :  { %v823_v5 = vsel %vm822_vm3, %v1073_v63, %v819_v3 }
0x1115   :  { %v828_v9 = vsel %vm825_vm4, %v827_v6, %v823_v5 }
0x1116   :  { %v835_v12 = vmul.f32 %v833_v11, %v828_v9 }
0x1173   :  { %v838_v8 = vpop.permute.xlu0 %837 }
0x1174   :  { %v840_v10 = vmul.f32 %v838_v8, %v828_v9 }
0x1176   :  { %842 = vrot.lane.b32.xlu2 %v840_v10, %s1211_s17 }
0x11d0   :  { %v843_v13 = vpop.permute.xlu2 %842 }
0x11d1   :  { %v845_v14 = vadd.f32 %v843_v13, %v835_v12 }
0x11d3   :  { %1074 = vtanh.f32 %v845_v14  ;;  %859 = vrot.lane.b32.xlu2 %v845_v14, %s1212_s3 }
0x11d9   :  { %v1075_v15 = vpop.eup %1074 }
0x11da   :  { %848 = vrot.lane.b32.xlu0 %v1075_v15, %s1205_s29 }
0x122d   :  { %v860_v16 = vpop.permute.xlu2 %859 }
0x122e   :  { %862 = vst.msk [vmem:[#allocation3] sm:$0xff] %vm92_vm0, %v860_v16 }
0x124c   :  { %v849_v18 = vpop.permute.xlu0 %848 }
0x124d   :  { %v851_v19 = vmul.f32 %v849_v18, %v828_v9 }
0x124f   :  { %869 = vrot.lane.b32.xlu1 %v851_v19, %s1211_s17 }
0x12c1   :  { %v870_v21 = vpop.permute.xlu1 %869 }
0x12c2   :  { %872 = vst.msk [vmem:[#allocation2] sm:$0xff] %vm92_vm0, %v870_v21 }
0x12c9   :  { %v876_v22 = vld [vmem:[#allocation2] sm:$0xff] }
0x12ca   :  { %v877_v23 = vpack.c.bf16 %v876_v22, %v876_v22 }
0x12cc   :  { %990 = vmatmul.msk.bf16.vlgmr.msra.gmra.mxu3 %vm92_vm0, %v877_v23 }
0x134f   :  { %v910_v25 = vpop.f32.mrf.mxu3 }
0x1350   :  { %v911_v26 = vadd.f32 %v1011_v24, %v910_v25 }
0x1352   :  { %914 = vst [vmem:[#allocation13] sm:$0xff] %v911_v26 }
0x1353   :  { %925 = dma.vmem_to_hbm [thread:$0]  %s921_s21, 128, %s923_s24, [#allocation7]  }
0x1357   :  { %v912_v27 = vpop.f32.mrf.mxu3 }
0x1358   :  { %1202 = dma.done.wait [#allocation7], 128  }
0x1359   :  { %1203 = vsyncadd [#allocation7], 4294967168 }
0x135a   :  { %930 = vsyncpa [#allocation6], 1 }
0x135b   :  { %931 = vsyncpa [#allocation9], 1 }
0x135c   :  { %932 = vsyncpa [#allocation12], 1 }
0x135d   :  { %933 = vsyncpa [#allocation7], 1 }

</bundles_post_ra>
